<compile_context>
chip_gen: v7x
topology: tpu7x:2x2x1
jax: 0.10.0
libtpu: 0.0.40
codegen_flags: <defaults>
</compile_context>

<pallas_src>
from functools import partial

import jax
import jax.numpy as jnp
from jax.experimental import pallas as pl
from jax.experimental.pallas import tpu as pltpu


def _layernorm(z, g, b, eps=1e-5):
    # PyTorch nn.LayerNorm: biased variance over the last dim, eps=1e-5.
    mu = jnp.mean(z, axis=-1, keepdims=True)
    var = jnp.mean((z - mu) ** 2, axis=-1, keepdims=True)
    return (z - mu) * jax.lax.rsqrt(var + eps) * g + b


def _mha_heads(q_all, k_all, v_all, wo_bf, bias, num_heads, d_k, d_v, recip):
    """Multi-head attention core on already-projected activations.

    q_all: (Sq, H*d_k) f32   k_all: (Skv, H*d_k) f32   v_all: (Skv, H*d_v) f32
    wo_bf: (H*d_v, D) bf16   bias:  None or (Sq, Skv) f32 additive (0 / -1e9)
    Returns (Sq, D) f32.  Attention scale is pre-folded into W_q.
    All MXU operands are bf16 (cast once, before the head loop); accumulation
    and softmax stay f32.  Head concat is replaced by per-head accumulation
    into the output projection.
    """
    q_bf = q_all.astype(jnp.bfloat16)
    k_bf = k_all.astype(jnp.bfloat16)
    v_bf = v_all.astype(jnp.bfloat16)
    s_q = q_all.shape[0]
    d_model = wo_bf.shape[1]
    out = jnp.zeros((s_q, d_model), jnp.float32)
    contract_last = (((1,), (1,)), ((), ()))          # q @ k^T without k transpose
    for h in range(num_heads):                         # static unroll over heads
        q = q_bf[:, h * d_k:(h + 1) * d_k]
        k = k_bf[:, h * d_k:(h + 1) * d_k]
        v = v_bf[:, h * d_v:(h + 1) * d_v]
        sims = jax.lax.dot_general(q, k, contract_last,
                                   preferred_element_type=jnp.float32)
        if bias is not None:
            sims = sims + bias                         # f32 mask-add (hoisted precompute)
        m = jnp.max(sims, axis=1, keepdims=True)
        p = jnp.exp(sims - m)
        att = p * recip(jnp.sum(p, axis=1, keepdims=True))   # softmax along col_dim
        head = jnp.dot(att.astype(jnp.bfloat16), v,
                       preferred_element_type=jnp.float32)    # (Sq, d_v)
        out = out + jnp.dot(head.astype(jnp.bfloat16),
                            wo_bf[h * d_v:(h + 1) * d_v, :],
                            preferred_element_type=jnp.float32)
    return out


def _decoder_forward(enc_bf, dec_q_f32, dec_kv_bf, bias, p, *, num_heads, d_k, d_v, recip):
    """Shared math used by the Pallas kernel (per query tile) and the JAX ref.

    enc_bf:    (Se, D) bf16   -- encoder encodings (K/V source for cross-attn)
    dec_q_f32: (Tq, D) f32    -- decoder query rows (also the residual input)
    dec_kv_bf: (Sd, D) bf16   -- full decoder sequence (K/V source for self-attn)
    bias:      None or (Tq, Sd) f32 additive mask for the self-attention.
    """
    H = num_heads
    dec_q_bf = dec_q_f32.astype(jnp.bfloat16)

    # --- masked multi-head self-attention on the decoder sequence ---------
    q_all = jnp.dot(dec_q_bf, p["wq_self"], preferred_element_type=jnp.float32)
    kv = jnp.dot(dec_kv_bf, p["w_kv_self"], preferred_element_type=jnp.float32)
    sa = _mha_heads(q_all, kv[:, :H * d_k], kv[:, H * d_k:], p["wo_self"],
                    bias, H, d_k, d_v, recip)
    x = _layernorm(sa + dec_q_f32, p["g1"], p["b1"])           # norm1 (+ dropout = id)

    # --- cross attention: Q from x, K/V from encoder encodings ------------
    q_all = jnp.dot(x.astype(jnp.bfloat16), p["wq_cross"],
                    preferred_element_type=jnp.float32)
    kv = jnp.dot(enc_bf, p["w_kv_cross"], preferred_element_type=jnp.float32)
    ca = _mha_heads(q_all, kv[:, :H * d_k], kv[:, H * d_k:], p["wo_cross"],
                    None, H, d_k, d_v, recip)
    y = _layernorm(ca + x, p["g2"], p["b2"])                   # norm2 (+ dropout = id)

    # --- feed-forward ------------------------------------------------------
    z = jnp.dot(y.astype(jnp.bfloat16), p["w1"],
                preferred_element_type=jnp.float32) + p["bff1"]
    z = jnp.maximum(z, 0.0)                                    # ReLU
    z = jnp.dot(z.astype(jnp.bfloat16), p["w2"],
                preferred_element_type=jnp.float32) + p["bff2"]
    return _layernorm(z + y, p["g3"], p["b3"])                 # norm3 (+ dropout = id)


def decoder_layer_kernel(*refs, num_heads, d_k, d_v, mask_mode):
    if mask_mode == "array":
        enc_ref, dec_t_ref, dec_f_ref, mask_ref = refs[:4]
        rest = refs[4:]
    else:
        enc_ref, dec_t_ref, dec_f_ref = refs[:3]
        mask_ref = None
        rest = refs[3:]
    (wq_s_ref, wkv_s_ref, wo_s_ref, g1_ref, b1_ref,
     wq_c_ref, wkv_c_ref, wo_c_ref, g2_ref, b2_ref,
     w1_ref, bff1_ref, w2_ref, bff2_ref, g3_ref, b3_ref, out_ref) = rest

    tile = dec_t_ref.shape[0]
    s_dec = dec_f_ref.shape[0]

    # Additive attention bias for the masked self-attention (f32, 0 / -1e9),
    # computed ONCE per tile and reused by every head.
    if mask_mode == "causal":
        row0 = pl.program_id(0) * tile
        rows = jax.lax.broadcasted_iota(jnp.int32, (tile, s_dec), 0) + row0
        cols = jax.lax.broadcasted_iota(jnp.int32, (tile, s_dec), 1)
        bias = jnp.where(cols > rows, jnp.float32(-1e9), jnp.float32(0.0))
    elif mask_mode == "array":
        bias = jnp.where(mask_ref[...] != 0.0, jnp.float32(-1e9), jnp.float32(0.0))
    else:
        bias = None

    p = {
        "wq_self": wq_s_ref[...], "w_kv_self": wkv_s_ref[...], "wo_self": wo_s_ref[...],
        "g1": g1_ref[...], "b1": b1_ref[...],
        "wq_cross": wq_c_ref[...], "w_kv_cross": wkv_c_ref[...], "wo_cross": wo_c_ref[...],
        "g2": g2_ref[...], "b2": b2_ref[...],
        "w1": w1_ref[...], "bff1": bff1_ref[...],
        "w2": w2_ref[...], "bff2": bff2_ref[...],
        "g3": g3_ref[...], "b3": b3_ref[...],
    }
    z = _decoder_forward(
        enc_ref[...], dec_t_ref[...], dec_f_ref[...], bias, p,
        num_heads=num_heads, d_k=d_k, d_v=d_v,
        recip=lambda s: pl.reciprocal(s, approx=True))          # EUP slot, ~free
    out_ref[...] = z.astype(out_ref.dtype)


def decoder_layer(encoder_encodings, decoder_encodings, params, mask=None,
                  causal=False, tile_sd=None):
    """encoder_encodings: (Se, D) f32; decoder_encodings: (Sd, D) f32.
    mask: optional (Sd, Sd) array, nonzero => masked (self-attention only).
    causal=True generates the causal mask in-kernel (no mask DMA)."""
    S_enc, D = encoder_encodings.shape
    S_dec, _ = decoder_encodings.shape
    H, d_k, d_v = params["num_heads"], params["d_k"], params["d_v"]

    if tile_sd is None:
        tile_sd = S_dec if S_dec <= 128 else 128
    assert S_dec % tile_sd == 0, "S_dec must be divisible by tile_sd"
    grid = (S_dec // tile_sd,)

    mask_mode = "causal" if causal else ("array" if mask is not None else "none")

    enc_bf = encoder_encodings.astype(jnp.bfloat16)
    dec_f32 = decoder_encodings.astype(jnp.float32)   # f32 residual fidelity
    dec_bf = decoder_encodings.astype(jnp.bfloat16)   # K/V source for self-attn

    const2 = lambda i: (0, 0)
    resident = lambda x: pl.BlockSpec(x.shape, const2)   # DMA'd once, VMEM-resident

    args = [enc_bf, dec_f32, dec_bf]
    in_specs = [
        resident(enc_bf),
        pl.BlockSpec((tile_sd, D), lambda i: (i, 0)),     # pipelined query tile
        resident(dec_bf),
    ]
    if mask_mode == "array":
        m = mask.astype(jnp.float32)
        args.append(m)
        in_specs.append(pl.BlockSpec((tile_sd, S_dec), lambda i: (i, 0)))

    weights = [
        params["wq_self"], params["w_kv_self"], params["wo_self"],
        params["g1"], params["b1"],
        params["wq_cross"], params["w_kv_cross"], params["wo_cross"],
        params["g2"], params["b2"],
        params["w1"], params["bff1"], params["w2"], params["bff2"],
        params["g3"], params["b3"],
    ]
    args += weights
    in_specs += [resident(w) for w in weights]

    kernel = partial(decoder_layer_kernel, num_heads=H, d_k=d_k, d_v=d_v,
                     mask_mode=mask_mode)
    # TODO(synk): emit bf16 output instead of f32 if the consumer tolerates it
    # (halves write-back DMA bytes; matters most on v5e).
    return pl.pallas_call(
        kernel,
        out_shape=jax.ShapeDtypeStruct((S_dec, D), jnp.float32),
        grid=grid,
        in_specs=in_specs,
        out_specs=pl.BlockSpec((tile_sd, D), lambda i: (i, 0)),
        compiler_params=pltpu.CompilerParams(
            dimension_semantics=("parallel",),          # independent query tiles
            vmem_limit_bytes=48 * 1024 * 1024),         # explicit budget (<= v7x 64 MiB)
    )(*args)


def init_params(key, d_model, d_k, d_v, num_heads):
    """Weights stored pre-transposed (kernel computes x @ W) and pre-fused:
    - wq_self / wq_cross   : (D, H*d_k)           (1/sqrt(d_k) folded into Q)
    - w_kv_self / w_kv_cross: (D, H*(d_k+d_v))    = [all-head K | all-head V]
    - wo_self / wo_cross   : (H*d_v, D)
    Matmul weights are bf16; LayerNorm params and biases stay f32.
    """
    ks = jax.random.split(key, 12)
    s = 0.05
    H = num_heads
    scale = 1.0 / jnp.sqrt(jnp.float32(d_k))
    w = lambda k, shape: s * jax.random.normal(k, shape, jnp.float32)

    wq_self = w(ks[0], (H, d_model, d_k)) * scale
    wk_self = w(ks[1], (H, d_model, d_k))
    wv_self = w(ks[2], (H, d_model, d_v))
    wq_cross = w(ks[3], (H, d_model, d_k)) * scale
    wk_cross = w(ks[4], (H, d_model, d_k))
    wv_cross = w(ks[5], (H, d_model, d_v))

    def heads_to_lanes(wh):  # (H, D, d) -> (D, H*d), head-major along lanes
        return jnp.transpose(wh, (1, 0, 2)).reshape(d_model, -1)

    bf = jnp.bfloat16
    return {
        "num_heads": H, "d_k": d_k, "d_v": d_v,
        "wq_self": heads_to_lanes(wq_self).astype(bf),
        "w_kv_self": jnp.concatenate(
            [heads_to_lanes(wk_self), heads_to_lanes(wv_self)], axis=1).astype(bf),
        "wo_self": w(ks[6], (H * d_v, d_model)).astype(bf),
        "g1": jnp.ones((1, d_model), jnp.float32),
        "b1": jnp.zeros((1, d_model), jnp.float32),
        "wq_cross": heads_to_lanes(wq_cross).astype(bf),
        "w_kv_cross": jnp.concatenate(
            [heads_to_lanes(wk_cross), heads_to_lanes(wv_cross)], axis=1).astype(bf),
        "wo_cross": w(ks[7], (H * d_v, d_model)).astype(bf),
        "g2": jnp.ones((1, d_model), jnp.float32),
        "b2": jnp.zeros((1, d_model), jnp.float32),
        "w1": w(ks[8], (d_model, d_model)).astype(bf),
        "bff1": s * jax.random.normal(ks[9], (1, d_model), jnp.float32),
        "w2": w(ks[10], (d_model, d_model)).astype(bf),
        "bff2": s * jax.random.normal(ks[11], (1, d_model), jnp.float32),
        "g3": jnp.ones((1, d_model), jnp.float32),
        "b3": jnp.zeros((1, d_model), jnp.float32),
    }


def decoder_layer_ref(encoder_encodings, decoder_encodings, params, mask=None):
    """Pure-JAX reference: identical math/dtype policy, exact reciprocal."""
    if mask is not None:
        bias = jnp.where(mask != 0.0, jnp.float32(-1e9), jnp.float32(0.0))
    else:
        bias = None
    dec_f32 = decoder_encodings.astype(jnp.float32)
    return _decoder_forward(
        encoder_encodings.astype(jnp.bfloat16),
        dec_f32, dec_f32.astype(jnp.bfloat16), bias, params,
        num_heads=params["num_heads"], d_k=params["d_k"], d_v=params["d_v"],
        recip=lambda s: 1.0 / s)


if __name__ == "__main__":
    # Small shapes consistent with the module (2-D [seq, d_model] encodings).
    # d_model = 128 keeps every store / intermediate lane-dense; H*d_k = 128.
    S_enc, S_dec = 16, 16
    d_model, d_k, d_v, num_heads = 128, 32, 32, 4
    TILE_SD = 8   # 2 grid steps over the decoder sequence

    key = jax.random.PRNGKey(0)
    k_enc, k_dec, k_p = jax.random.split(key, 3)
    enc = jax.random.normal(k_enc, (S_enc, d_model), jnp.float32)
    dec = jax.random.normal(k_dec, (S_dec, d_model), jnp.float32)
    params = init_params(k_p, d_model, d_k, d_v, num_heads)

    # Causal self-attention mask, generated in-kernel (no (Sd,Sd) DMA).
    out = decoder_layer(enc, dec, params, causal=True, tile_sd=TILE_SD)
    out = jax.block_until_ready(out)

    # Reference uses an explicit causal mask array with the same semantics.
    mask = (jnp.arange(S_dec)[None, :] > jnp.arange(S_dec)[:, None]).astype(jnp.float32)
    ref = decoder_layer_ref(enc, dec, params, mask=mask)

    assert out.shape == (S_dec, d_model)
    assert jnp.allclose(out, ref, rtol=1e-2, atol=1e-2), "kernel mismatch vs reference"

    print("KERNEL_OK")
</pallas_src>

<mosaic_0001>
module attributes {stable_mosaic.version = 11 : i64} {
  func.func @decoder_layer_kernel(%arg0: i32, %arg1: memref<16x128xbf16, #tpu.memory_space<vmem>>, %arg2: memref<8x128xf32, #tpu.memory_space<vmem>>, %arg3: memref<16x128xbf16, #tpu.memory_space<vmem>>, %arg4: memref<128x128xbf16, #tpu.memory_space<vmem>>, %arg5: memref<128x256xbf16, #tpu.memory_space<vmem>>, %arg6: memref<128x128xbf16, #tpu.memory_space<vmem>>, %arg7: memref<1x128xf32, #tpu.memory_space<vmem>>, %arg8: memref<1x128xf32, #tpu.memory_space<vmem>>, %arg9: memref<128x128xbf16, #tpu.memory_space<vmem>>, %arg10: memref<128x256xbf16, #tpu.memory_space<vmem>>, %arg11: memref<128x128xbf16, #tpu.memory_space<vmem>>, %arg12: memref<1x128xf32, #tpu.memory_space<vmem>>, %arg13: memref<1x128xf32, #tpu.memory_space<vmem>>, %arg14: memref<128x128xbf16, #tpu.memory_space<vmem>>, %arg15: memref<1x128xf32, #tpu.memory_space<vmem>>, %arg16: memref<128x128xbf16, #tpu.memory_space<vmem>>, %arg17: memref<1x128xf32, #tpu.memory_space<vmem>>, %arg18: memref<1x128xf32, #tpu.memory_space<vmem>>, %arg19: memref<1x128xf32, #tpu.memory_space<vmem>>, %arg20: memref<8x128xf32, #tpu.memory_space<vmem>>) attributes {dimension_semantics = [#tpu.dimension_semantics<parallel>], iteration_bounds = array<i64: 2>, scalar_prefetch = 0 : i64, scratch_operands = 0 : i64, tpu.core_type = #tpu.core_type<tc>, window_params = [{pipeline_mode = #tpu.pipeline_mode<synchronous>, transform_indices = @transform_0, window_bounds = array<i64: 16, 128>}, {transform_indices = @transform_1, window_bounds = array<i64: 8, 128>}, {pipeline_mode = #tpu.pipeline_mode<synchronous>, transform_indices = @transform_2, window_bounds = array<i64: 16, 128>}, {pipeline_mode = #tpu.pipeline_mode<synchronous>, transform_indices = @transform_3, window_bounds = array<i64: 128, 128>}, {pipeline_mode = #tpu.pipeline_mode<synchronous>, transform_indices = @transform_4, window_bounds = array<i64: 128, 256>}, {pipeline_mode = #tpu.pipeline_mode<synchronous>, transform_indices = @transform_5, window_bounds = array<i64: 128, 128>}, {pipeline_mode = #tpu.pipeline_mode<synchronous>, transform_indices = @transform_6, window_bounds = array<i64: 1, 128>}, {pipeline_mode = #tpu.pipeline_mode<synchronous>, transform_indices = @transform_7, window_bounds = array<i64: 1, 128>}, {pipeline_mode = #tpu.pipeline_mode<synchronous>, transform_indices = @transform_8, window_bounds = array<i64: 128, 128>}, {pipeline_mode = #tpu.pipeline_mode<synchronous>, transform_indices = @transform_9, window_bounds = array<i64: 128, 256>}, {pipeline_mode = #tpu.pipeline_mode<synchronous>, transform_indices = @transform_10, window_bounds = array<i64: 128, 128>}, {pipeline_mode = #tpu.pipeline_mode<synchronous>, transform_indices = @transform_11, window_bounds = array<i64: 1, 128>}, {pipeline_mode = #tpu.pipeline_mode<synchronous>, transform_indices = @transform_12, window_bounds = array<i64: 1, 128>}, {pipeline_mode = #tpu.pipeline_mode<synchronous>, transform_indices = @transform_13, window_bounds = array<i64: 128, 128>}, {pipeline_mode = #tpu.pipeline_mode<synchronous>, transform_indices = @transform_14, window_bounds = array<i64: 1, 128>}, {pipeline_mode = #tpu.pipeline_mode<synchronous>, transform_indices = @transform_15, window_bounds = array<i64: 128, 128>}, {pipeline_mode = #tpu.pipeline_mode<synchronous>, transform_indices = @transform_16, window_bounds = array<i64: 1, 128>}, {pipeline_mode = #tpu.pipeline_mode<synchronous>, transform_indices = @transform_17, window_bounds = array<i64: 1, 128>}, {pipeline_mode = #tpu.pipeline_mode<synchronous>, transform_indices = @transform_18, window_bounds = array<i64: 1, 128>}, {transform_indices = @transform_19, window_bounds = array<i64: 8, 128>}]} {
    %c8_i32 = arith.constant 8 : i32
    %0 = arith.muli %arg0, %c8_i32 : i32
    %1 = tpu.iota {dimensions = array<i32: 0>} : vector<8x16xi32>
    %2 = vector.broadcast %0 : i32 to vector<8x16xi32>
    %3 = arith.addi %1, %2 : vector<8x16xi32>
    %4 = tpu.iota {dimensions = array<i32: 1>} : vector<8x16xi32>
    %5 = arith.cmpi sgt, %4, %3 : vector<8x16xi32>
    %cst = arith.constant -1.000000e+09 : f32
    %cst_0 = arith.constant 0.000000e+00 : f32
    %6 = vector.broadcast %cst : f32 to vector<8x16xf32>
    %7 = vector.broadcast %cst_0 : f32 to vector<8x16xf32>
    %8 = arith.select %5, %6, %7 : vector<8x16xi1>, vector<8x16xf32>
    %c0 = arith.constant 0 : index
    %c0_1 = arith.constant 0 : index
    %9 = vector.load %arg4[%c0, %c0_1] : memref<128x128xbf16, #tpu.memory_space<vmem>>, vector<128x128xbf16>
    %c0_2 = arith.constant 0 : index
    %c0_3 = arith.constant 0 : index
    %10 = vector.load %arg5[%c0_2, %c0_3] : memref<128x256xbf16, #tpu.memory_space<vmem>>, vector<128x256xbf16>
    %c0_4 = arith.constant 0 : index
    %c0_5 = arith.constant 0 : index
    %11 = vector.load %arg6[%c0_4, %c0_5] : memref<128x128xbf16, #tpu.memory_space<vmem>>, vector<128x128xbf16>
    %c0_6 = arith.constant 0 : index
    %c0_7 = arith.constant 0 : index
    %12 = vector.load %arg7[%c0_6, %c0_7] : memref<1x128xf32, #tpu.memory_space<vmem>>, vector<1x128xf32>
    %c0_8 = arith.constant 0 : index
    %c0_9 = arith.constant 0 : index
    %13 = vector.load %arg8[%c0_8, %c0_9] : memref<1x128xf32, #tpu.memory_space<vmem>>, vector<1x128xf32>
    %c0_10 = arith.constant 0 : index
    %c0_11 = arith.constant 0 : index
    %14 = vector.load %arg9[%c0_10, %c0_11] : memref<128x128xbf16, #tpu.memory_space<vmem>>, vector<128x128xbf16>
    %c0_12 = arith.constant 0 : index
    %c0_13 = arith.constant 0 : index
    %15 = vector.load %arg10[%c0_12, %c0_13] : memref<128x256xbf16, #tpu.memory_space<vmem>>, vector<128x256xbf16>
    %c0_14 = arith.constant 0 : index
    %c0_15 = arith.constant 0 : index
    %16 = vector.load %arg11[%c0_14, %c0_15] : memref<128x128xbf16, #tpu.memory_space<vmem>>, vector<128x128xbf16>
    %c0_16 = arith.constant 0 : index
    %c0_17 = arith.constant 0 : index
    %17 = vector.load %arg12[%c0_16, %c0_17] : memref<1x128xf32, #tpu.memory_space<vmem>>, vector<1x128xf32>
    %c0_18 = arith.constant 0 : index
    %c0_19 = arith.constant 0 : index
    %18 = vector.load %arg13[%c0_18, %c0_19] : memref<1x128xf32, #tpu.memory_space<vmem>>, vector<1x128xf32>
    %c0_20 = arith.constant 0 : index
    %c0_21 = arith.constant 0 : index
    %19 = vector.load %arg14[%c0_20, %c0_21] : memref<128x128xbf16, #tpu.memory_space<vmem>>, vector<128x128xbf16>
    %c0_22 = arith.constant 0 : index
    %c0_23 = arith.constant 0 : index
    %20 = vector.load %arg15[%c0_22, %c0_23] : memref<1x128xf32, #tpu.memory_space<vmem>>, vector<1x128xf32>
    %c0_24 = arith.constant 0 : index
    %c0_25 = arith.constant 0 : index
    %21 = vector.load %arg16[%c0_24, %c0_25] : memref<128x128xbf16, #tpu.memory_space<vmem>>, vector<128x128xbf16>
    %c0_26 = arith.constant 0 : index
    %c0_27 = arith.constant 0 : index
    %22 = vector.load %arg17[%c0_26, %c0_27] : memref<1x128xf32, #tpu.memory_space<vmem>>, vector<1x128xf32>
    %c0_28 = arith.constant 0 : index
    %c0_29 = arith.constant 0 : index
    %23 = vector.load %arg18[%c0_28, %c0_29] : memref<1x128xf32, #tpu.memory_space<vmem>>, vector<1x128xf32>
    %c0_30 = arith.constant 0 : index
    %c0_31 = arith.constant 0 : index
    %24 = vector.load %arg19[%c0_30, %c0_31] : memref<1x128xf32, #tpu.memory_space<vmem>>, vector<1x128xf32>
    %c0_32 = arith.constant 0 : index
    %c0_33 = arith.constant 0 : index
    %25 = vector.load %arg1[%c0_32, %c0_33] : memref<16x128xbf16, #tpu.memory_space<vmem>>, vector<16x128xbf16>
    %c0_34 = arith.constant 0 : index
    %c0_35 = arith.constant 0 : index
    %26 = vector.load %arg2[%c0_34, %c0_35] : memref<8x128xf32, #tpu.memory_space<vmem>>, vector<8x128xf32>
    %c0_36 = arith.constant 0 : index
    %c0_37 = arith.constant 0 : index
    %27 = vector.load %arg3[%c0_36, %c0_37] : memref<16x128xbf16, #tpu.memory_space<vmem>>, vector<16x128xbf16>
    %28 = arith.truncf %26 : vector<8x128xf32> to vector<8x128xbf16>
    %cst_38 = arith.constant dense<0.000000e+00> : vector<8x128xf32>
    %29 = tpu.matmul %28, %9, %cst_38 {dimension_numbers = #tpu.dot_dimension_numbers<[1], [0], [0], [1], [0, 0, 1, 1], [], []>} : vector<8x128xbf16>, vector<128x128xbf16>, vector<8x128xf32> -> vector<8x128xf32>
    %cst_39 = arith.constant dense<0.000000e+00> : vector<16x256xf32>
    %30 = tpu.matmul %27, %10, %cst_39 {dimension_numbers = #tpu.dot_dimension_numbers<[1], [0], [0], [1], [0, 0, 1, 1], [], []>} : vector<16x128xbf16>, vector<128x256xbf16>, vector<16x256xf32> -> vector<16x256xf32>
    %31 = vector.extract_strided_slice %30 {offsets = [0, 0], sizes = [16, 128], strides = [1, 1]} : vector<16x256xf32> to vector<16x128xf32>
    %32 = vector.extract_strided_slice %30 {offsets = [0, 128], sizes = [16, 128], strides = [1, 1]} : vector<16x256xf32> to vector<16x128xf32>
    %33 = arith.truncf %29 : vector<8x128xf32> to vector<8x128xbf16>
    %34 = arith.truncf %31 : vector<16x128xf32> to vector<16x128xbf16>
    %35 = arith.truncf %32 : vector<16x128xf32> to vector<16x128xbf16>
    %cst_40 = arith.constant 0.000000e+00 : f32
    %36 = vector.broadcast %cst_40 : f32 to vector<8x128xf32>
    %37 = vector.extract_strided_slice %33 {offsets = [0, 0], sizes = [8, 32], strides = [1, 1]} : vector<8x128xbf16> to vector<8x32xbf16>
    %38 = vector.extract_strided_slice %34 {offsets = [0, 0], sizes = [16, 32], strides = [1, 1]} : vector<16x128xbf16> to vector<16x32xbf16>
    %39 = vector.extract_strided_slice %35 {offsets = [0, 0], sizes = [16, 32], strides = [1, 1]} : vector<16x128xbf16> to vector<16x32xbf16>
    %cst_41 = arith.constant dense<0.000000e+00> : vector<8x16xf32>
    %40 = tpu.matmul %37, %38, %cst_41 {dimension_numbers = #tpu.dot_dimension_numbers<[1], [1], [0], [0], [0, 0, 1, 0], [], []>} : vector<8x32xbf16>, vector<16x32xbf16>, vector<8x16xf32> -> vector<8x16xf32>
    %41 = arith.addf %40, %8 : vector<8x16xf32>
    %cst_42 = arith.constant dense<0xFF800000> : vector<8xf32>
    %42 = vector.multi_reduction <maximumf>, %41, %cst_42 [1] : vector<8x16xf32> to vector<8xf32>
    %43 = vector.shape_cast %42 : vector<8xf32> to vector<8x1xf32>
    %44 = vector.broadcast %43 : vector<8x1xf32> to vector<8x16xf32>
    %45 = arith.subf %41, %44 : vector<8x16xf32>
    %46 = math.exp %45 : vector<8x16xf32>
    %cst_43 = arith.constant dense<0.000000e+00> : vector<8xf32>
    %47 = vector.multi_reduction <add>, %46, %cst_43 [1] : vector<8x16xf32> to vector<8xf32>
    %48 = vector.shape_cast %47 : vector<8xf32> to vector<8x1xf32>
    %49 = tpu.reciprocal %48 {approx = true} : vector<8x1xf32> -> vector<8x1xf32>
    %50 = vector.broadcast %49 : vector<8x1xf32> to vector<8x16xf32>
    %51 = arith.mulf %46, %50 : vector<8x16xf32>
    %52 = arith.truncf %51 : vector<8x16xf32> to vector<8x16xbf16>
    %cst_44 = arith.constant dense<0.000000e+00> : vector<8x32xf32>
    %53 = tpu.matmul %52, %39, %cst_44 {dimension_numbers = #tpu.dot_dimension_numbers<[1], [0], [0], [1], [0, 0, 1, 1], [], []>} : vector<8x16xbf16>, vector<16x32xbf16>, vector<8x32xf32> -> vector<8x32xf32>
    %54 = arith.truncf %53 : vector<8x32xf32> to vector<8x32xbf16>
    %55 = vector.extract_strided_slice %11 {offsets = [0, 0], sizes = [32, 128], strides = [1, 1]} : vector<128x128xbf16> to vector<32x128xbf16>
    %cst_45 = arith.constant dense<0.000000e+00> : vector<8x128xf32>
    %56 = tpu.matmul %54, %55, %cst_45 {dimension_numbers = #tpu.dot_dimension_numbers<[1], [0], [0], [1], [0, 0, 1, 1], [], []>} : vector<8x32xbf16>, vector<32x128xbf16>, vector<8x128xf32> -> vector<8x128xf32>
    %57 = arith.addf %36, %56 : vector<8x128xf32>
    %58 = vector.extract_strided_slice %33 {offsets = [0, 32], sizes = [8, 32], strides = [1, 1]} : vector<8x128xbf16> to vector<8x32xbf16>
    %59 = vector.extract_strided_slice %34 {offsets = [0, 32], sizes = [16, 32], strides = [1, 1]} : vector<16x128xbf16> to vector<16x32xbf16>
    %60 = vector.extract_strided_slice %35 {offsets = [0, 32], sizes = [16, 32], strides = [1, 1]} : vector<16x128xbf16> to vector<16x32xbf16>
    %cst_46 = arith.constant dense<0.000000e+00> : vector<8x16xf32>
    %61 = tpu.matmul %58, %59, %cst_46 {dimension_numbers = #tpu.dot_dimension_numbers<[1], [1], [0], [0], [0, 0, 1, 0], [], []>} : vector<8x32xbf16>, vector<16x32xbf16>, vector<8x16xf32> -> vector<8x16xf32>
    %62 = arith.addf %61, %8 : vector<8x16xf32>
    %cst_47 = arith.constant dense<0xFF800000> : vector<8xf32>
    %63 = vector.multi_reduction <maximumf>, %62, %cst_47 [1] : vector<8x16xf32> to vector<8xf32>
    %64 = vector.shape_cast %63 : vector<8xf32> to vector<8x1xf32>
    %65 = vector.broadcast %64 : vector<8x1xf32> to vector<8x16xf32>
    %66 = arith.subf %62, %65 : vector<8x16xf32>
    %67 = math.exp %66 : vector<8x16xf32>
    %cst_48 = arith.constant dense<0.000000e+00> : vector<8xf32>
    %68 = vector.multi_reduction <add>, %67, %cst_48 [1] : vector<8x16xf32> to vector<8xf32>
    %69 = vector.shape_cast %68 : vector<8xf32> to vector<8x1xf32>
    %70 = tpu.reciprocal %69 {approx = true} : vector<8x1xf32> -> vector<8x1xf32>
    %71 = vector.broadcast %70 : vector<8x1xf32> to vector<8x16xf32>
    %72 = arith.mulf %67, %71 : vector<8x16xf32>
    %73 = arith.truncf %72 : vector<8x16xf32> to vector<8x16xbf16>
    %cst_49 = arith.constant dense<0.000000e+00> : vector<8x32xf32>
    %74 = tpu.matmul %73, %60, %cst_49 {dimension_numbers = #tpu.dot_dimension_numbers<[1], [0], [0], [1], [0, 0, 1, 1], [], []>} : vector<8x16xbf16>, vector<16x32xbf16>, vector<8x32xf32> -> vector<8x32xf32>
    %75 = arith.truncf %74 : vector<8x32xf32> to vector<8x32xbf16>
    %76 = vector.extract_strided_slice %11 {offsets = [32, 0], sizes = [32, 128], strides = [1, 1]} : vector<128x128xbf16> to vector<32x128xbf16>
    %cst_50 = arith.constant dense<0.000000e+00> : vector<8x128xf32>
    %77 = tpu.matmul %75, %76, %cst_50 {dimension_numbers = #tpu.dot_dimension_numbers<[1], [0], [0], [1], [0, 0, 1, 1], [], []>} : vector<8x32xbf16>, vector<32x128xbf16>, vector<8x128xf32> -> vector<8x128xf32>
    %78 = arith.addf %57, %77 : vector<8x128xf32>
    %79 = vector.extract_strided_slice %33 {offsets = [0, 64], sizes = [8, 32], strides = [1, 1]} : vector<8x128xbf16> to vector<8x32xbf16>
    %80 = vector.extract_strided_slice %34 {offsets = [0, 64], sizes = [16, 32], strides = [1, 1]} : vector<16x128xbf16> to vector<16x32xbf16>
    %81 = vector.extract_strided_slice %35 {offsets = [0, 64], sizes = [16, 32], strides = [1, 1]} : vector<16x128xbf16> to vector<16x32xbf16>
    %cst_51 = arith.constant dense<0.000000e+00> : vector<8x16xf32>
    %82 = tpu.matmul %79, %80, %cst_51 {dimension_numbers = #tpu.dot_dimension_numbers<[1], [1], [0], [0], [0, 0, 1, 0], [], []>} : vector<8x32xbf16>, vector<16x32xbf16>, vector<8x16xf32> -> vector<8x16xf32>
    %83 = arith.addf %82, %8 : vector<8x16xf32>
    %cst_52 = arith.constant dense<0xFF800000> : vector<8xf32>
    %84 = vector.multi_reduction <maximumf>, %83, %cst_52 [1] : vector<8x16xf32> to vector<8xf32>
    %85 = vector.shape_cast %84 : vector<8xf32> to vector<8x1xf32>
    %86 = vector.broadcast %85 : vector<8x1xf32> to vector<8x16xf32>
    %87 = arith.subf %83, %86 : vector<8x16xf32>
    %88 = math.exp %87 : vector<8x16xf32>
    %cst_53 = arith.constant dense<0.000000e+00> : vector<8xf32>
    %89 = vector.multi_reduction <add>, %88, %cst_53 [1] : vector<8x16xf32> to vector<8xf32>
    %90 = vector.shape_cast %89 : vector<8xf32> to vector<8x1xf32>
    %91 = tpu.reciprocal %90 {approx = true} : vector<8x1xf32> -> vector<8x1xf32>
    %92 = vector.broadcast %91 : vector<8x1xf32> to vector<8x16xf32>
    %93 = arith.mulf %88, %92 : vector<8x16xf32>
    %94 = arith.truncf %93 : vector<8x16xf32> to vector<8x16xbf16>
    %cst_54 = arith.constant dense<0.000000e+00> : vector<8x32xf32>
    %95 = tpu.matmul %94, %81, %cst_54 {dimension_numbers = #tpu.dot_dimension_numbers<[1], [0], [0], [1], [0, 0, 1, 1], [], []>} : vector<8x16xbf16>, vector<16x32xbf16>, vector<8x32xf32> -> vector<8x32xf32>
    %96 = arith.truncf %95 : vector<8x32xf32> to vector<8x32xbf16>
    %97 = vector.extract_strided_slice %11 {offsets = [64, 0], sizes = [32, 128], strides = [1, 1]} : vector<128x128xbf16> to vector<32x128xbf16>
    %cst_55 = arith.constant dense<0.000000e+00> : vector<8x128xf32>
    %98 = tpu.matmul %96, %97, %cst_55 {dimension_numbers = #tpu.dot_dimension_numbers<[1], [0], [0], [1], [0, 0, 1, 1], [], []>} : vector<8x32xbf16>, vector<32x128xbf16>, vector<8x128xf32> -> vector<8x128xf32>
    %99 = arith.addf %78, %98 : vector<8x128xf32>
    %100 = vector.extract_strided_slice %33 {offsets = [0, 96], sizes = [8, 32], strides = [1, 1]} : vector<8x128xbf16> to vector<8x32xbf16>
    %101 = vector.extract_strided_slice %34 {offsets = [0, 96], sizes = [16, 32], strides = [1, 1]} : vector<16x128xbf16> to vector<16x32xbf16>
    %102 = vector.extract_strided_slice %35 {offsets = [0, 96], sizes = [16, 32], strides = [1, 1]} : vector<16x128xbf16> to vector<16x32xbf16>
    %cst_56 = arith.constant dense<0.000000e+00> : vector<8x16xf32>
    %103 = tpu.matmul %100, %101, %cst_56 {dimension_numbers = #tpu.dot_dimension_numbers<[1], [1], [0], [0], [0, 0, 1, 0], [], []>} : vector<8x32xbf16>, vector<16x32xbf16>, vector<8x16xf32> -> vector<8x16xf32>
    %104 = arith.addf %103, %8 : vector<8x16xf32>
    %cst_57 = arith.constant dense<0xFF800000> : vector<8xf32>
    %105 = vector.multi_reduction <maximumf>, %104, %cst_57 [1] : vector<8x16xf32> to vector<8xf32>
    %106 = vector.shape_cast %105 : vector<8xf32> to vector<8x1xf32>
    %107 = vector.broadcast %106 : vector<8x1xf32> to vector<8x16xf32>
    %108 = arith.subf %104, %107 : vector<8x16xf32>
    %109 = math.exp %108 : vector<8x16xf32>
    %cst_58 = arith.constant dense<0.000000e+00> : vector<8xf32>
    %110 = vector.multi_reduction <add>, %109, %cst_58 [1] : vector<8x16xf32> to vector<8xf32>
    %111 = vector.shape_cast %110 : vector<8xf32> to vector<8x1xf32>
    %112 = tpu.reciprocal %111 {approx = true} : vector<8x1xf32> -> vector<8x1xf32>
    %113 = vector.broadcast %112 : vector<8x1xf32> to vector<8x16xf32>
    %114 = arith.mulf %109, %113 : vector<8x16xf32>
    %115 = arith.truncf %114 : vector<8x16xf32> to vector<8x16xbf16>
    %cst_59 = arith.constant dense<0.000000e+00> : vector<8x32xf32>
    %116 = tpu.matmul %115, %102, %cst_59 {dimension_numbers = #tpu.dot_dimension_numbers<[1], [0], [0], [1], [0, 0, 1, 1], [], []>} : vector<8x16xbf16>, vector<16x32xbf16>, vector<8x32xf32> -> vector<8x32xf32>
    %117 = arith.truncf %116 : vector<8x32xf32> to vector<8x32xbf16>
    %118 = vector.extract_strided_slice %11 {offsets = [96, 0], sizes = [32, 128], strides = [1, 1]} : vector<128x128xbf16> to vector<32x128xbf16>
    %cst_60 = arith.constant dense<0.000000e+00> : vector<8x128xf32>
    %119 = tpu.matmul %117, %118, %cst_60 {dimension_numbers = #tpu.dot_dimension_numbers<[1], [0], [0], [1], [0, 0, 1, 1], [], []>} : vector<8x32xbf16>, vector<32x128xbf16>, vector<8x128xf32> -> vector<8x128xf32>
    %120 = arith.addf %99, %119 : vector<8x128xf32>
    %121 = arith.addf %120, %26 : vector<8x128xf32>
    %cst_61 = arith.constant dense<0.000000e+00> : vector<8xf32>
    %122 = vector.multi_reduction <add>, %121, %cst_61 [1] : vector<8x128xf32> to vector<8xf32>
    %123 = vector.shape_cast %122 : vector<8xf32> to vector<8x1xf32>
    %cst_62 = arith.constant 1.280000e+02 : f32
    %124 = vector.broadcast %cst_62 : f32 to vector<8x1xf32>
    %125 = arith.divf %123, %124 : vector<8x1xf32>
    %126 = vector.broadcast %125 : vector<8x1xf32> to vector<8x128xf32>
    %127 = arith.subf %121, %126 : vector<8x128xf32>
    %128 = arith.mulf %127, %127 : vector<8x128xf32>
    %cst_63 = arith.constant dense<0.000000e+00> : vector<8xf32>
    %129 = vector.multi_reduction <add>, %128, %cst_63 [1] : vector<8x128xf32> to vector<8xf32>
    %130 = vector.shape_cast %129 : vector<8xf32> to vector<8x1xf32>
    %cst_64 = arith.constant 1.280000e+02 : f32
    %131 = vector.broadcast %cst_64 : f32 to vector<8x1xf32>
    %132 = arith.divf %130, %131 : vector<8x1xf32>
    %133 = vector.broadcast %125 : vector<8x1xf32> to vector<8x128xf32>
    %134 = arith.subf %121, %133 : vector<8x128xf32>
    %cst_65 = arith.constant 9.99999974E-6 : f32
    %135 = vector.broadcast %cst_65 : f32 to vector<8x1xf32>
    %136 = arith.addf %132, %135 : vector<8x1xf32>
    %137 = math.rsqrt %136 : vector<8x1xf32>
    %138 = vector.broadcast %137 : vector<8x1xf32> to vector<8x128xf32>
    %139 = arith.mulf %134, %138 : vector<8x128xf32>
    %140 = vector.broadcast %12 : vector<1x128xf32> to vector<8x128xf32>
    %141 = arith.mulf %139, %140 : vector<8x128xf32>
    %142 = vector.broadcast %13 : vector<1x128xf32> to vector<8x128xf32>
    %143 = arith.addf %141, %142 : vector<8x128xf32>
    %144 = arith.truncf %143 : vector<8x128xf32> to vector<8x128xbf16>
    %cst_66 = arith.constant dense<0.000000e+00> : vector<8x128xf32>
    %145 = tpu.matmul %144, %14, %cst_66 {dimension_numbers = #tpu.dot_dimension_numbers<[1], [0], [0], [1], [0, 0, 1, 1], [], []>} : vector<8x128xbf16>, vector<128x128xbf16>, vector<8x128xf32> -> vector<8x128xf32>
    %cst_67 = arith.constant dense<0.000000e+00> : vector<16x256xf32>
    %146 = tpu.matmul %25, %15, %cst_67 {dimension_numbers = #tpu.dot_dimension_numbers<[1], [0], [0], [1], [0, 0, 1, 1], [], []>} : vector<16x128xbf16>, vector<128x256xbf16>, vector<16x256xf32> -> vector<16x256xf32>
    %147 = vector.extract_strided_slice %146 {offsets = [0, 0], sizes = [16, 128], strides = [1, 1]} : vector<16x256xf32> to vector<16x128xf32>
    %148 = vector.extract_strided_slice %146 {offsets = [0, 128], sizes = [16, 128], strides = [1, 1]} : vector<16x256xf32> to vector<16x128xf32>
    %149 = arith.truncf %145 : vector<8x128xf32> to vector<8x128xbf16>
    %150 = arith.truncf %147 : vector<16x128xf32> to vector<16x128xbf16>
    %151 = arith.truncf %148 : vector<16x128xf32> to vector<16x128xbf16>
    %cst_68 = arith.constant 0.000000e+00 : f32
    %152 = vector.broadcast %cst_68 : f32 to vector<8x128xf32>
    %153 = vector.extract_strided_slice %149 {offsets = [0, 0], sizes = [8, 32], strides = [1, 1]} : vector<8x128xbf16> to vector<8x32xbf16>
    %154 = vector.extract_strided_slice %150 {offsets = [0, 0], sizes = [16, 32], strides = [1, 1]} : vector<16x128xbf16> to vector<16x32xbf16>
    %155 = vector.extract_strided_slice %151 {offsets = [0, 0], sizes = [16, 32], strides = [1, 1]} : vector<16x128xbf16> to vector<16x32xbf16>
    %cst_69 = arith.constant dense<0.000000e+00> : vector<8x16xf32>
    %156 = tpu.matmul %153, %154, %cst_69 {dimension_numbers = #tpu.dot_dimension_numbers<[1], [1], [0], [0], [0, 0, 1, 0], [], []>} : vector<8x32xbf16>, vector<16x32xbf16>, vector<8x16xf32> -> vector<8x16xf32>
    %cst_70 = arith.constant dense<0xFF800000> : vector<8xf32>
    %157 = vector.multi_reduction <maximumf>, %156, %cst_70 [1] : vector<8x16xf32> to vector<8xf32>
    %158 = vector.shape_cast %157 : vector<8xf32> to vector<8x1xf32>
    %159 = vector.broadcast %158 : vector<8x1xf32> to vector<8x16xf32>
    %160 = arith.subf %156, %159 : vector<8x16xf32>
    %161 = math.exp %160 : vector<8x16xf32>
    %cst_71 = arith.constant dense<0.000000e+00> : vector<8xf32>
    %162 = vector.multi_reduction <add>, %161, %cst_71 [1] : vector<8x16xf32> to vector<8xf32>
    %163 = vector.shape_cast %162 : vector<8xf32> to vector<8x1xf32>
    %164 = tpu.reciprocal %163 {approx = true} : vector<8x1xf32> -> vector<8x1xf32>
    %165 = vector.broadcast %164 : vector<8x1xf32> to vector<8x16xf32>
    %166 = arith.mulf %161, %165 : vector<8x16xf32>
    %167 = arith.truncf %166 : vector<8x16xf32> to vector<8x16xbf16>
    %cst_72 = arith.constant dense<0.000000e+00> : vector<8x32xf32>
    %168 = tpu.matmul %167, %155, %cst_72 {dimension_numbers = #tpu.dot_dimension_numbers<[1], [0], [0], [1], [0, 0, 1, 1], [], []>} : vector<8x16xbf16>, vector<16x32xbf16>, vector<8x32xf32> -> vector<8x32xf32>
    %169 = arith.truncf %168 : vector<8x32xf32> to vector<8x32xbf16>
    %170 = vector.extract_strided_slice %16 {offsets = [0, 0], sizes = [32, 128], strides = [1, 1]} : vector<128x128xbf16> to vector<32x128xbf16>
    %cst_73 = arith.constant dense<0.000000e+00> : vector<8x128xf32>
    %171 = tpu.matmul %169, %170, %cst_73 {dimension_numbers = #tpu.dot_dimension_numbers<[1], [0], [0], [1], [0, 0, 1, 1], [], []>} : vector<8x32xbf16>, vector<32x128xbf16>, vector<8x128xf32> -> vector<8x128xf32>
    %172 = arith.addf %152, %171 : vector<8x128xf32>
    %173 = vector.extract_strided_slice %149 {offsets = [0, 32], sizes = [8, 32], strides = [1, 1]} : vector<8x128xbf16> to vector<8x32xbf16>
    %174 = vector.extract_strided_slice %150 {offsets = [0, 32], sizes = [16, 32], strides = [1, 1]} : vector<16x128xbf16> to vector<16x32xbf16>
    %175 = vector.extract_strided_slice %151 {offsets = [0, 32], sizes = [16, 32], strides = [1, 1]} : vector<16x128xbf16> to vector<16x32xbf16>
    %cst_74 = arith.constant dense<0.000000e+00> : vector<8x16xf32>
    %176 = tpu.matmul %173, %174, %cst_74 {dimension_numbers = #tpu.dot_dimension_numbers<[1], [1], [0], [0], [0, 0, 1, 0], [], []>} : vector<8x32xbf16>, vector<16x32xbf16>, vector<8x16xf32> -> vector<8x16xf32>
    %cst_75 = arith.constant dense<0xFF800000> : vector<8xf32>
    %177 = vector.multi_reduction <maximumf>, %176, %cst_75 [1] : vector<8x16xf32> to vector<8xf32>
    %178 = vector.shape_cast %177 : vector<8xf32> to vector<8x1xf32>
    %179 = vector.broadcast %178 : vector<8x1xf32> to vector<8x16xf32>
    %180 = arith.subf %176, %179 : vector<8x16xf32>
    %181 = math.exp %180 : vector<8x16xf32>
    %cst_76 = arith.constant dense<0.000000e+00> : vector<8xf32>
    %182 = vector.multi_reduction <add>, %181, %cst_76 [1] : vector<8x16xf32> to vector<8xf32>
    %183 = vector.shape_cast %182 : vector<8xf32> to vector<8x1xf32>
    %184 = tpu.reciprocal %183 {approx = true} : vector<8x1xf32> -> vector<8x1xf32>
    %185 = vector.broadcast %184 : vector<8x1xf32> to vector<8x16xf32>
    %186 = arith.mulf %181, %185 : vector<8x16xf32>
    %187 = arith.truncf %186 : vector<8x16xf32> to vector<8x16xbf16>
    %cst_77 = arith.constant dense<0.000000e+00> : vector<8x32xf32>
    %188 = tpu.matmul %187, %175, %cst_77 {dimension_numbers = #tpu.dot_dimension_numbers<[1], [0], [0], [1], [0, 0, 1, 1], [], []>} : vector<8x16xbf16>, vector<16x32xbf16>, vector<8x32xf32> -> vector<8x32xf32>
    %189 = arith.truncf %188 : vector<8x32xf32> to vector<8x32xbf16>
    %190 = vector.extract_strided_slice %16 {offsets = [32, 0], sizes = [32, 128], strides = [1, 1]} : vector<128x128xbf16> to vector<32x128xbf16>
    %cst_78 = arith.constant dense<0.000000e+00> : vector<8x128xf32>
    %191 = tpu.matmul %189, %190, %cst_78 {dimension_numbers = #tpu.dot_dimension_numbers<[1], [0], [0], [1], [0, 0, 1, 1], [], []>} : vector<8x32xbf16>, vector<32x128xbf16>, vector<8x128xf32> -> vector<8x128xf32>
    %192 = arith.addf %172, %191 : vector<8x128xf32>
    %193 = vector.extract_strided_slice %149 {offsets = [0, 64], sizes = [8, 32], strides = [1, 1]} : vector<8x128xbf16> to vector<8x32xbf16>
    %194 = vector.extract_strided_slice %150 {offsets = [0, 64], sizes = [16, 32], strides = [1, 1]} : vector<16x128xbf16> to vector<16x32xbf16>
    %195 = vector.extract_strided_slice %151 {offsets = [0, 64], sizes = [16, 32], strides = [1, 1]} : vector<16x128xbf16> to vector<16x32xbf16>
    %cst_79 = arith.constant dense<0.000000e+00> : vector<8x16xf32>
    %196 = tpu.matmul %193, %194, %cst_79 {dimension_numbers = #tpu.dot_dimension_numbers<[1], [1], [0], [0], [0, 0, 1, 0], [], []>} : vector<8x32xbf16>, vector<16x32xbf16>, vector<8x16xf32> -> vector<8x16xf32>
    %cst_80 = arith.constant dense<0xFF800000> : vector<8xf32>
    %197 = vector.multi_reduction <maximumf>, %196, %cst_80 [1] : vector<8x16xf32> to vector<8xf32>
    %198 = vector.shape_cast %197 : vector<8xf32> to vector<8x1xf32>
    %199 = vector.broadcast %198 : vector<8x1xf32> to vector<8x16xf32>
    %200 = arith.subf %196, %199 : vector<8x16xf32>
    %201 = math.exp %200 : vector<8x16xf32>
    %cst_81 = arith.constant dense<0.000000e+00> : vector<8xf32>
    %202 = vector.multi_reduction <add>, %201, %cst_81 [1] : vector<8x16xf32> to vector<8xf32>
    %203 = vector.shape_cast %202 : vector<8xf32> to vector<8x1xf32>
    %204 = tpu.reciprocal %203 {approx = true} : vector<8x1xf32> -> vector<8x1xf32>
    %205 = vector.broadcast %204 : vector<8x1xf32> to vector<8x16xf32>
    %206 = arith.mulf %201, %205 : vector<8x16xf32>
    %207 = arith.truncf %206 : vector<8x16xf32> to vector<8x16xbf16>
    %cst_82 = arith.constant dense<0.000000e+00> : vector<8x32xf32>
    %208 = tpu.matmul %207, %195, %cst_82 {dimension_numbers = #tpu.dot_dimension_numbers<[1], [0], [0], [1], [0, 0, 1, 1], [], []>} : vector<8x16xbf16>, vector<16x32xbf16>, vector<8x32xf32> -> vector<8x32xf32>
    %209 = arith.truncf %208 : vector<8x32xf32> to vector<8x32xbf16>
    %210 = vector.extract_strided_slice %16 {offsets = [64, 0], sizes = [32, 128], strides = [1, 1]} : vector<128x128xbf16> to vector<32x128xbf16>
    %cst_83 = arith.constant dense<0.000000e+00> : vector<8x128xf32>
    %211 = tpu.matmul %209, %210, %cst_83 {dimension_numbers = #tpu.dot_dimension_numbers<[1], [0], [0], [1], [0, 0, 1, 1], [], []>} : vector<8x32xbf16>, vector<32x128xbf16>, vector<8x128xf32> -> vector<8x128xf32>
    %212 = arith.addf %192, %211 : vector<8x128xf32>
    %213 = vector.extract_strided_slice %149 {offsets = [0, 96], sizes = [8, 32], strides = [1, 1]} : vector<8x128xbf16> to vector<8x32xbf16>
    %214 = vector.extract_strided_slice %150 {offsets = [0, 96], sizes = [16, 32], strides = [1, 1]} : vector<16x128xbf16> to vector<16x32xbf16>
    %215 = vector.extract_strided_slice %151 {offsets = [0, 96], sizes = [16, 32], strides = [1, 1]} : vector<16x128xbf16> to vector<16x32xbf16>
    %cst_84 = arith.constant dense<0.000000e+00> : vector<8x16xf32>
    %216 = tpu.matmul %213, %214, %cst_84 {dimension_numbers = #tpu.dot_dimension_numbers<[1], [1], [0], [0], [0, 0, 1, 0], [], []>} : vector<8x32xbf16>, vector<16x32xbf16>, vector<8x16xf32> -> vector<8x16xf32>
    %cst_85 = arith.constant dense<0xFF800000> : vector<8xf32>
    %217 = vector.multi_reduction <maximumf>, %216, %cst_85 [1] : vector<8x16xf32> to vector<8xf32>
    %218 = vector.shape_cast %217 : vector<8xf32> to vector<8x1xf32>
    %219 = vector.broadcast %218 : vector<8x1xf32> to vector<8x16xf32>
    %220 = arith.subf %216, %219 : vector<8x16xf32>
    %221 = math.exp %220 : vector<8x16xf32>
    %cst_86 = arith.constant dense<0.000000e+00> : vector<8xf32>
    %222 = vector.multi_reduction <add>, %221, %cst_86 [1] : vector<8x16xf32> to vector<8xf32>
    %223 = vector.shape_cast %222 : vector<8xf32> to vector<8x1xf32>
    %224 = tpu.reciprocal %223 {approx = true} : vector<8x1xf32> -> vector<8x1xf32>
    %225 = vector.broadcast %224 : vector<8x1xf32> to vector<8x16xf32>
    %226 = arith.mulf %221, %225 : vector<8x16xf32>
    %227 = arith.truncf %226 : vector<8x16xf32> to vector<8x16xbf16>
    %cst_87 = arith.constant dense<0.000000e+00> : vector<8x32xf32>
    %228 = tpu.matmul %227, %215, %cst_87 {dimension_numbers = #tpu.dot_dimension_numbers<[1], [0], [0], [1], [0, 0, 1, 1], [], []>} : vector<8x16xbf16>, vector<16x32xbf16>, vector<8x32xf32> -> vector<8x32xf32>
    %229 = arith.truncf %228 : vector<8x32xf32> to vector<8x32xbf16>
    %230 = vector.extract_strided_slice %16 {offsets = [96, 0], sizes = [32, 128], strides = [1, 1]} : vector<128x128xbf16> to vector<32x128xbf16>
    %cst_88 = arith.constant dense<0.000000e+00> : vector<8x128xf32>
    %231 = tpu.matmul %229, %230, %cst_88 {dimension_numbers = #tpu.dot_dimension_numbers<[1], [0], [0], [1], [0, 0, 1, 1], [], []>} : vector<8x32xbf16>, vector<32x128xbf16>, vector<8x128xf32> -> vector<8x128xf32>
    %232 = arith.addf %212, %231 : vector<8x128xf32>
    %233 = arith.addf %232, %143 : vector<8x128xf32>
    %cst_89 = arith.constant dense<0.000000e+00> : vector<8xf32>
    %234 = vector.multi_reduction <add>, %233, %cst_89 [1] : vector<8x128xf32> to vector<8xf32>
    %235 = vector.shape_cast %234 : vector<8xf32> to vector<8x1xf32>
    %cst_90 = arith.constant 1.280000e+02 : f32
    %236 = vector.broadcast %cst_90 : f32 to vector<8x1xf32>
    %237 = arith.divf %235, %236 : vector<8x1xf32>
    %238 = vector.broadcast %237 : vector<8x1xf32> to vector<8x128xf32>
    %239 = arith.subf %233, %238 : vector<8x128xf32>
    %240 = arith.mulf %239, %239 : vector<8x128xf32>
    %cst_91 = arith.constant dense<0.000000e+00> : vector<8xf32>
    %241 = vector.multi_reduction <add>, %240, %cst_91 [1] : vector<8x128xf32> to vector<8xf32>
    %242 = vector.shape_cast %241 : vector<8xf32> to vector<8x1xf32>
    %cst_92 = arith.constant 1.280000e+02 : f32
    %243 = vector.broadcast %cst_92 : f32 to vector<8x1xf32>
    %244 = arith.divf %242, %243 : vector<8x1xf32>
    %245 = vector.broadcast %237 : vector<8x1xf32> to vector<8x128xf32>
    %246 = arith.subf %233, %245 : vector<8x128xf32>
    %cst_93 = arith.constant 9.99999974E-6 : f32
    %247 = vector.broadcast %cst_93 : f32 to vector<8x1xf32>
    %248 = arith.addf %244, %247 : vector<8x1xf32>
    %249 = math.rsqrt %248 : vector<8x1xf32>
    %250 = vector.broadcast %249 : vector<8x1xf32> to vector<8x128xf32>
    %251 = arith.mulf %246, %250 : vector<8x128xf32>
    %252 = vector.broadcast %17 : vector<1x128xf32> to vector<8x128xf32>
    %253 = arith.mulf %251, %252 : vector<8x128xf32>
    %254 = vector.broadcast %18 : vector<1x128xf32> to vector<8x128xf32>
    %255 = arith.addf %253, %254 : vector<8x128xf32>
    %256 = arith.truncf %255 : vector<8x128xf32> to vector<8x128xbf16>
    %cst_94 = arith.constant dense<0.000000e+00> : vector<8x128xf32>
    %257 = tpu.matmul %256, %19, %cst_94 {dimension_numbers = #tpu.dot_dimension_numbers<[1], [0], [0], [1], [0, 0, 1, 1], [], []>} : vector<8x128xbf16>, vector<128x128xbf16>, vector<8x128xf32> -> vector<8x128xf32>
    %258 = vector.broadcast %20 : vector<1x128xf32> to vector<8x128xf32>
    %259 = arith.addf %257, %258 : vector<8x128xf32>
    %cst_95 = arith.constant 0.000000e+00 : f32
    %260 = vector.broadcast %cst_95 : f32 to vector<8x128xf32>
    %261 = arith.maximumf %259, %260 : vector<8x128xf32>
    %262 = arith.truncf %261 : vector<8x128xf32> to vector<8x128xbf16>
    %cst_96 = arith.constant dense<0.000000e+00> : vector<8x128xf32>
    %263 = tpu.matmul %262, %21, %cst_96 {dimension_numbers = #tpu.dot_dimension_numbers<[1], [0], [0], [1], [0, 0, 1, 1], [], []>} : vector<8x128xbf16>, vector<128x128xbf16>, vector<8x128xf32> -> vector<8x128xf32>
    %264 = vector.broadcast %22 : vector<1x128xf32> to vector<8x128xf32>
    %265 = arith.addf %263, %264 : vector<8x128xf32>
    %266 = arith.addf %265, %255 : vector<8x128xf32>
    %cst_97 = arith.constant dense<0.000000e+00> : vector<8xf32>
    %267 = vector.multi_reduction <add>, %266, %cst_97 [1] : vector<8x128xf32> to vector<8xf32>
    %268 = vector.shape_cast %267 : vector<8xf32> to vector<8x1xf32>
    %cst_98 = arith.constant 1.280000e+02 : f32
    %269 = vector.broadcast %cst_98 : f32 to vector<8x1xf32>
    %270 = arith.divf %268, %269 : vector<8x1xf32>
    %271 = vector.broadcast %270 : vector<8x1xf32> to vector<8x128xf32>
    %272 = arith.subf %266, %271 : vector<8x128xf32>
    %273 = arith.mulf %272, %272 : vector<8x128xf32>
    %cst_99 = arith.constant dense<0.000000e+00> : vector<8xf32>
    %274 = vector.multi_reduction <add>, %273, %cst_99 [1] : vector<8x128xf32> to vector<8xf32>
    %275 = vector.shape_cast %274 : vector<8xf32> to vector<8x1xf32>
    %cst_100 = arith.constant 1.280000e+02 : f32
    %276 = vector.broadcast %cst_100 : f32 to vector<8x1xf32>
    %277 = arith.divf %275, %276 : vector<8x1xf32>
    %278 = vector.broadcast %270 : vector<8x1xf32> to vector<8x128xf32>
    %279 = arith.subf %266, %278 : vector<8x128xf32>
    %cst_101 = arith.constant 9.99999974E-6 : f32
    %280 = vector.broadcast %cst_101 : f32 to vector<8x1xf32>
    %281 = arith.addf %277, %280 : vector<8x1xf32>
    %282 = math.rsqrt %281 : vector<8x1xf32>
    %283 = vector.broadcast %282 : vector<8x1xf32> to vector<8x128xf32>
    %284 = arith.mulf %279, %283 : vector<8x128xf32>
    %285 = vector.broadcast %23 : vector<1x128xf32> to vector<8x128xf32>
    %286 = arith.mulf %284, %285 : vector<8x128xf32>
    %287 = vector.broadcast %24 : vector<1x128xf32> to vector<8x128xf32>
    %288 = arith.addf %286, %287 : vector<8x128xf32>
    %c0_102 = arith.constant 0 : index
    %c0_103 = arith.constant 0 : index
    %289 = vector.load %arg20[%c0_102, %c0_103] : memref<8x128xf32, #tpu.memory_space<vmem>>, vector<8x128xf32>
    tpu.vector_store %arg20[%c0_102, %c0_103], %288 {strides = array<i32>} : memref<8x128xf32, #tpu.memory_space<vmem>>, vector<8x128xf32>,
    return
  }
  func.func @transform_0(%arg0: i32) -> (i32, i32) {
    %c0_i32 = arith.constant 0 : i32
    %c0_i32_0 = arith.constant 0 : i32
    %c0_i32_1 = arith.constant 0 : i32
    return %c0_i32, %c0_i32_0 : i32, i32
  }
  func.func @transform_1(%arg0: i32) -> (i32, i32) {
    %c0_i32 = arith.constant 0 : i32
    %c0_i32_0 = arith.constant 0 : i32
    return %arg0, %c0_i32 : i32, i32
  }
  func.func @transform_2(%arg0: i32) -> (i32, i32) {
    %c0_i32 = arith.constant 0 : i32
    %c0_i32_0 = arith.constant 0 : i32
    %c0_i32_1 = arith.constant 0 : i32
    return %c0_i32, %c0_i32_0 : i32, i32
  }
  func.func @transform_3(%arg0: i32) -> (i32, i32) {
    %c0_i32 = arith.constant 0 : i32
    %c0_i32_0 = arith.constant 0 : i32
    %c0_i32_1 = arith.constant 0 : i32
    return %c0_i32, %c0_i32_0 : i32, i32
  }
  func.func @transform_4(%arg0: i32) -> (i32, i32) {
    %c0_i32 = arith.constant 0 : i32
    %c0_i32_0 = arith.constant 0 : i32
    %c0_i32_1 = arith.constant 0 : i32
    return %c0_i32, %c0_i32_0 : i32, i32
  }
  func.func @transform_5(%arg0: i32) -> (i32, i32) {
    %c0_i32 = arith.constant 0 : i32
    %c0_i32_0 = arith.constant 0 : i32
    %c0_i32_1 = arith.constant 0 : i32
    return %c0_i32, %c0_i32_0 : i32, i32
  }
  func.func @transform_6(%arg0: i32) -> (i32, i32) {
    %c0_i32 = arith.constant 0 : i32
    %c0_i32_0 = arith.constant 0 : i32
    %c0_i32_1 = arith.constant 0 : i32
    return %c0_i32, %c0_i32_0 : i32, i32
  }
  func.func @transform_7(%arg0: i32) -> (i32, i32) {
    %c0_i32 = arith.constant 0 : i32
    %c0_i32_0 = arith.constant 0 : i32
    %c0_i32_1 = arith.constant 0 : i32
    return %c0_i32, %c0_i32_0 : i32, i32
  }
  func.func @transform_8(%arg0: i32) -> (i32, i32) {
    %c0_i32 = arith.constant 0 : i32
    %c0_i32_0 = arith.constant 0 : i32
    %c0_i32_1 = arith.constant 0 : i32
    return %c0_i32, %c0_i32_0 : i32, i32
  }
  func.func @transform_9(%arg0: i32) -> (i32, i32) {
    %c0_i32 = arith.constant 0 : i32
    %c0_i32_0 = arith.constant 0 : i32
    %c0_i32_1 = arith.constant 0 : i32
    return %c0_i32, %c0_i32_0 : i32, i32
  }
  func.func @transform_10(%arg0: i32) -> (i32, i32) {
    %c0_i32 = arith.constant 0 : i32
    %c0_i32_0 = arith.constant 0 : i32
    %c0_i32_1 = arith.constant 0 : i32
    return %c0_i32, %c0_i32_0 : i32, i32
  }
  func.func @transform_11(%arg0: i32) -> (i32, i32) {
    %c0_i32 = arith.constant 0 : i32
    %c0_i32_0 = arith.constant 0 : i32
    %c0_i32_1 = arith.constant 0 : i32
    return %c0_i32, %c0_i32_0 : i32, i32
  }
  func.func @transform_12(%arg0: i32) -> (i32, i32) {
    %c0_i32 = arith.constant 0 : i32
    %c0_i32_0 = arith.constant 0 : i32
    %c0_i32_1 = arith.constant 0 : i32
    return %c0_i32, %c0_i32_0 : i32, i32
  }
  func.func @transform_13(%arg0: i32) -> (i32, i32) {
    %c0_i32 = arith.constant 0 : i32
    %c0_i32_0 = arith.constant 0 : i32
    %c0_i32_1 = arith.constant 0 : i32
    return %c0_i32, %c0_i32_0 : i32, i32
  }
  func.func @transform_14(%arg0: i32) -> (i32, i32) {
    %c0_i32 = arith.constant 0 : i32
    %c0_i32_0 = arith.constant 0 : i32
    %c0_i32_1 = arith.constant 0 : i32
    return %c0_i32, %c0_i32_0 : i32, i32
  }
  func.func @transform_15(%arg0: i32) -> (i32, i32) {
    %c0_i32 = arith.constant 0 : i32
    %c0_i32_0 = arith.constant 0 : i32
    %c0_i32_1 = arith.constant 0 : i32
    return %c0_i32, %c0_i32_0 : i32, i32
  }
  func.func @transform_16(%arg0: i32) -> (i32, i32) {
    %c0_i32 = arith.constant 0 : i32
    %c0_i32_0 = arith.constant 0 : i32
    %c0_i32_1 = arith.constant 0 : i32
    return %c0_i32, %c0_i32_0 : i32, i32
  }
  func.func @transform_17(%arg0: i32) -> (i32, i32) {
    %c0_i32 = arith.constant 0 : i32
    %c0_i32_0 = arith.constant 0 : i32
    %c0_i32_1 = arith.constant 0 : i32
    return %c0_i32, %c0_i32_0 : i32, i32
  }
  func.func @transform_18(%arg0: i32) -> (i32, i32) {
    %c0_i32 = arith.constant 0 : i32
    %c0_i32_0 = arith.constant 0 : i32
    %c0_i32_1 = arith.constant 0 : i32
    return %c0_i32, %c0_i32_0 : i32, i32
  }
  func.func @transform_19(%arg0: i32) -> (i32, i32) {
    %c0_i32 = arith.constant 0 : i32
    %c0_i32_0 = arith.constant 0 : i32
    return %arg0, %c0_i32 : i32, i32
  }
}

</mosaic_0001>

<bundles_post_ra>
// kernel: tpu_custom_call.1
= control target key start
LH: loop header
LB: loop body
LE: loop exit
PB: predicated region body
PF: predicated region fallthrough
CT: control target
= control target key end

     0   :  { %s5127_s0 = inlined_call_operand.hbm [shape: bf16[16,128], index: 0, kind: input, shape index: {}]   ;;  %s5128_s1 = inlined_call_operand.hbm [shape: f32[16,128], index: 1, kind: input, shape index: {}]   ;;  %s5129_s2 = inlined_call_operand.hbm [shape: bf16[16,128], index: 2, kind: input, shape index: {}]   ;;  %s5130_s3 = inlined_call_operand.hbm [shape: bf16[128,128], index: 3, kind: input, shape index: {}]   ;;  %s5131_s4 = inlined_call_operand.hbm [shape: bf16[128,256], index: 4, kind: input, shape index: {}]   ;;  %s5132_s5 = inlined_call_operand.hbm [shape: bf16[128,128], index: 5, kind: input, shape index: {}]   ;;  %s5133_s6 = inlined_call_operand.vmem [shape: f32[1,128], index: 6, kind: input, shape index: {}]   ;;  %s5134_s7 = inlined_call_operand.vmem [shape: f32[1,128], index: 7, kind: input, shape index: {}]   ;;  %s5135_s8 = inlined_call_operand.hbm [shape: bf16[128,128], index: 8, kind: input, shape index: {}]   ;;  %s5136_s9 = inlined_call_operand.hbm [shape: bf16[128,256], index: 9, kind: input, shape index: {}]   ;;  %s5137_s10 = inlined_call_operand.hbm [shape: bf16[128,128], index: 10, kind: input, shape index: {}]   ;;  %s5138_s11 = inlined_call_operand.vmem [shape: f32[1,128], index: 11, kind: input, shape index: {}]   ;;  %s5139_s12 = inlined_call_operand.vmem [shape: f32[1,128], index: 12, kind: input, shape index: {}]   ;;  %s5140_s13 = inlined_call_operand.hbm [shape: bf16[128,128], index: 13, kind: input, shape index: {}]   ;;  %s5141_s14 = inlined_call_operand.vmem [shape: f32[1,128], index: 14, kind: input, shape index: {}]   ;;  %s5142_s15 = inlined_call_operand.hbm [shape: bf16[128,128], index: 15, kind: input, shape index: {}]   ;;  %s5143_s16 = inlined_call_operand.vmem [shape: f32[1,128], index: 16, kind: input, shape index: {}]   ;;  %s5144_s17 = inlined_call_operand.vmem [shape: f32[1,128], index: 17, kind: input, shape index: {}]   ;;  %s5145_s18 = inlined_call_operand.vmem [shape: f32[1,128], index: 18, kind: input, shape index: {}]   ;;  %s5146_s19 = inlined_call_operand.hbm [shape: f32[16,128], index: 19, kind: output, shape index: {}]  }
   0x1   :  { %5163 = sst [smem:[#allocation29_spill]] %s5127_s0 }
   0x2   :  { %5164 = sst [smem:[#allocation30_spill]] %s5128_s1 }
   0x3   :  { %5165 = sst [smem:[#allocation31_spill]] %s5129_s2 }
   0x4   :  { %5166 = sst [smem:[#allocation32_spill]] %s5130_s3 }
   0x5   :  { %5167 = sst [smem:[#allocation33_spill]] %s5131_s4 }
   0x6   :  { %5168 = sst [smem:[#allocation34_spill]] %s5132_s5 }
   0x7   :  { %5169 = sst [smem:[#allocation35_spill]] %s5133_s6 }
   0x8   :  { %5170 = sst [smem:[#allocation36_spill]] %s5134_s7 }
   0x9   :  { %5171 = sst [smem:[#allocation37_spill]] %s5138_s11 }
   0xa   :  { %5172 = sst [smem:[#allocation38_spill]] %s5139_s12 }
   0xb   :  { %5173 = sst [smem:[#allocation39_spill]] %s5141_s14 }
   0xc   :  { %5174 = sst [smem:[#allocation40_spill]] %s5143_s16 }
   0xd   :  { %5175 = sst [smem:[#allocation41_spill]] %s5144_s17 }
   0xe   :  { %5176 = sst [smem:[#allocation42_spill]] %s5145_s18 }
   0xf   :  { %5177 = sst [smem:[#allocation43_spill]] %s5146_s19 }
  0x10   :  { %24 = vsyncpa [#allocation3], 0 }
  0x11   :  { %25 = vsyncpa [#allocation6], 0 }
  0x12   :  { %27 = vsyncpa [#allocation6 + $0x1], 0 }
  0x13   :  { %28 = vsyncpa [#allocation9], 0 }
  0x14   :  { %29 = vsyncpa [#allocation12], 0 }
  0x15   :  { %30 = vsyncpa [#allocation15], 0 }
  0x16   :  { %31 = vsyncpa [#allocation18], 0 }
  0x17   :  { %32 = vsyncpa [#allocation4], 0 }
  0x18   :  { %34 = vsyncpa [#allocation4 + $0x1], 0  ;;  %s4414_s0 = smov 0   ;;  %s4416_s30 = smov 0  }
  0x19   :  { %s4418_s20 = smov 0   ;;  %s4420_s21 = smov 0  }
  0x1a LB: > { %s4435_s1 = sadd.s32 4294967295, %s4290_s21   ;;  %p3119_p0 = scmp.ge.s32.totalorder %s4290_s21, 1  ;;  %s4290_s21 = sphi %s4420_s21, %s5226_s21   ;;  %s4286_s20 = sphi %s4418_s20, %s5225_s20   ;;  %s4282_s30 = sphi %s4416_s30, %s5224_s30   ;;  %s4278_s0 = sphi %s4414_s0, %s5223_s0  }
  0x1b   : > { %p5153_p1 = scmp.eq.s32.totalorder %s4435_s1, 0  ;;  %p475_p2 = scmp.lt.s32.totalorder %s4290_s21, 3 }
  0x1c   : > { %s4292_s2 = smov [#allocation7]   ;;  %s4293_s24 = smov [#allocation8]  }
  0x1d   : > { %p4440_p3 = pnand %p3119_p0, %p475_p2  ;;  %s500_s23 = sshll.u32 %s4292_s2, 4  ;;  %s4444_s23 = int_to_ptr.vmem [resolvable:$true] %s500_s23 }
  0x1e   : > { %s513_s25 = sshll.u32 %s4293_s24, 4  ;;  %s4294_s26 = smov [#allocation11]   ;;  %s4455_s25 = int_to_ptr.vmem [resolvable:$true] %s513_s25 }
  0x1f   : > { %s5178_s22 = scalar_select %p4440_p3, 1, 0 }
  0x20   : > { %p3641_p5 = pneg %p4440_p3  ;;  %s539_s27 = sshll.u32 %s4294_s26, 4  ;;  %s4457_s27 = int_to_ptr.vmem [resolvable:$true] %s539_s27 }
  0x21   : > { %s5180_s2 = sld [smem:[#allocation31_spill]] }
  0x22   : > { %p4451_p6 = pnand %p3641_p5, %p5153_p1 }
  0x24   : > { %p4467_p8 = pneg %p4451_p6 }
  0x27   : > { %s3890_s19 = scalar_lea.hbm %s5180_s2, 128 }
  0x28   : > { %p3891_p7 = scmp.ne.s32.totalorder %s5180_s2, %s3890_s19  ;;  %p3897_p11 = scmp.lt.u32.totalorder %s3890_s19, %s5180_s2 }
  0x2a   : > { %p3893_p9 = pnand %p4467_p8, %p3891_p7 }
  0x2c   : > { %p3894_p10 = pneg %p3893_p9 }
  0x2e   : > { %p3899_p12 = pnand %p3897_p11, %p3894_p10 }
  0x30   : > { %3902 = shalt.err (!%p3899_p12)
}
  0x31   : > { %s3903_s17 = scalar_lea.vmem %s4444_s23, 128  ;;  %p3911_p5 = scmp.lt.s32.totalorder %s4444_s23, %s4444_s23 }
  0x32   : > { %p3904_p13 = scmp.ne.s32.totalorder %s4444_s23, %s3903_s17  ;;  %p3912_p4 = scmp.lt.s32.totalorder %s3903_s17, %s3903_s17 }
  0x34   : > { %p3906_p0 = pnand %p3904_p13, %p4467_p8  ;;  %p3913_p7 = por %p3912_p4, %p3911_p5 }
  0x36   : > { %p3907_p2 = pneg %p3906_p0 }
  0x38   : > { %p3914_p9 = pnand %p3913_p7, %p3907_p2 }
  0x3a   : > { %3917 = shalt.err (!%p3914_p9)
}
  0x3b   : > { %s5157_s18 = smov 64   ;;  %s5159_s16 = smov 4  }
  0x3c   : > { %3647 = dma.hbm_to_vmem [thread:$0]  (!%p4451_p6), %s5180_s2, 128, %s4444_s23, [#allocation6], %s5157_s18, %s5157_s18, %s5159_s16  }
  0x3d   : > { %s5182_s14 = sld [smem:[#allocation32_spill]] }
  0x43   : > { %s3918_s17 = scalar_lea.hbm %s5182_s14, 1024 }
  0x44   : > { %p3919_p4 = scmp.ne.s32.totalorder %s5182_s14, %s3918_s17  ;;  %p3925_p12 = scmp.lt.u32.totalorder %s3918_s17, %s5182_s14 }
  0x46   : > { %p3921_p10 = pnand %p3919_p4, %p4467_p8 }
  0x48   : > { %p3922_p11 = pneg %p3921_p10 }
  0x4a   : > { %p3927_p13 = pnand %p3925_p12, %p3922_p11 }
  0x4c   : > { %3930 = shalt.err (!%p3927_p13)
}
  0x4d   : > { %s3931_s23 = scalar_lea.vmem %s4455_s25, 1024  ;;  %p3939_p7 = scmp.lt.s32.totalorder %s4455_s25, %s4455_s25 }
  0x4e   : > { %p3932_p0 = scmp.ne.s32.totalorder %s4455_s25, %s3931_s23  ;;  %p3940_p9 = scmp.lt.s32.totalorder %s3931_s23, %s3931_s23 }
  0x50   : > { %p3934_p2 = pnand %p3932_p0, %p4467_p8  ;;  %p3941_p4 = por %p3940_p9, %p3939_p7 }
  0x52   : > { %p3935_p5 = pneg %p3934_p2 }
  0x54   : > { %p3942_p10 = pnand %p3941_p4, %p3935_p5 }
  0x56   : > { %3945 = shalt.err (!%p3942_p10)
}
  0x57   : > { %3650 = dma.hbm_to_vmem [thread:$0]  (!%p4451_p6), %s5182_s14, 1024, %s4455_s25, [#allocation9], %s5157_s18, %s5157_s18, %s5159_s16  }
  0x58   : > { %s5183_s5 = sld [smem:[#allocation34_spill]] }
  0x5e   : > { %s3946_s19 = scalar_lea.hbm %s5183_s5, 1024 }
  0x5f   : > { %p3947_p11 = scmp.ne.s32.totalorder %s5183_s5, %s3946_s19  ;;  %p3953_p0 = scmp.lt.u32.totalorder %s3946_s19, %s5183_s5 }
  0x61   : > { %p3949_p12 = pnand %p3947_p11, %p4467_p8 }
  0x63   : > { %p3950_p13 = pneg %p3949_p12 }
  0x65   : > { %p3955_p2 = pnand %p3953_p0, %p3950_p13 }
  0x67   : > { %3958 = shalt.err (!%p3955_p2)
}
  0x68   : > { %s3959_s25 = scalar_lea.vmem %s4457_s27, 1024  ;;  %p3967_p4 = scmp.lt.s32.totalorder %s4457_s27, %s4457_s27 }
  0x69   : > { %p3960_p5 = scmp.ne.s32.totalorder %s4457_s27, %s3959_s25  ;;  %p3968_p10 = scmp.lt.s32.totalorder %s3959_s25, %s3959_s25 }
  0x6b   : > { %p3962_p7 = pnand %p3960_p5, %p4467_p8  ;;  %p3969_p11 = por %p3968_p10, %p3967_p4 }
  0x6d   : > { %p3963_p9 = pneg %p3962_p7 }
  0x6f   : > { %p3970_p12 = pnand %p3969_p11, %p3963_p9 }
  0x71   : > { %3973 = shalt.err (!%p3970_p12)
}
  0x72   : > { %3656 = dma.hbm_to_vmem [thread:$0]  (!%p4451_p6), %s5183_s5, 1024, %s4457_s27, [#allocation12], %s5157_s18, %s5157_s18, %s5159_s16  }
  0x73   : > { %s4297_s7 = smov [#allocation14]   ;;  %s4298_s12 = smov [#allocation17]  }
  0x74   : > { %s571_s11 = sshll.u32 %s4297_s7, 4  ;;  %s603_s19 = sshll.u32 %s4298_s12, 4  ;;  %s572_s11 = int_to_ptr.vmem [resolvable:$true] %s571_s11  ;;  %s604_s19 = int_to_ptr.vmem [resolvable:$true] %s603_s19 }
  0x75   : > { %s3974_s26 = scalar_lea.hbm %s5136_s9, 2048 }
  0x76   : > { %p3975_p13 = scmp.ne.s32.totalorder %s5136_s9, %s3974_s26  ;;  %p3981_p5 = scmp.lt.u32.totalorder %s3974_s26, %s5136_s9 }
  0x78   : > { %p3977_p0 = pnand %p3975_p13, %p4467_p8 }
  0x7a   : > { %p3978_p2 = pneg %p3977_p0 }
  0x7c   : > { %p3983_p7 = pnand %p3981_p5, %p3978_p2 }
  0x7e   : > { %3986 = shalt.err (!%p3983_p7)
}
  0x7f   : > { %s3987_s27 = scalar_lea.vmem %s572_s11, 2048  ;;  %p3995_p11 = scmp.lt.s32.totalorder %s572_s11, %s572_s11 }
  0x80   : > { %p3988_p9 = scmp.ne.s32.totalorder %s572_s11, %s3987_s27  ;;  %p3996_p12 = scmp.lt.s32.totalorder %s3987_s27, %s3987_s27 }
  0x82   : > { %p3990_p4 = pnand %p3988_p9, %p4467_p8  ;;  %p3997_p1 = por %p3996_p12, %p3995_p11 }
  0x84   : > { %p3991_p10 = pneg %p3990_p4 }
  0x86   : > { %p3998_p3 = pnand %p3997_p1, %p3991_p10 }
  0x88   : > { %4001 = shalt.err (!%p3998_p3)
}
  0x89   : > { %s5155_s6 = smov 128   ;;  %s5156_s7 = smov 8  }
  0x8a   : > { %3662 = dma.hbm_to_vmem [thread:$0]  (!%p4451_p6), %s5136_s9, 2048, %s572_s11, [#allocation15], %s5155_s6, %s5155_s6, %s5156_s7  }
  0x8b   : > { %s4002_s26 = scalar_lea.hbm %s5140_s13, 1024 }
  0x8c   : > { %p4003_p1 = scmp.ne.s32.totalorder %s5140_s13, %s4002_s26  ;;  %p4009_p0 = scmp.lt.u32.totalorder %s4002_s26, %s5140_s13 }
  0x8e   : > { %p4005_p3 = pnand %p4003_p1, %p4467_p8 }
  0x90   : > { %p4006_p13 = pneg %p4005_p3 }
  0x92   : > { %p4011_p2 = pnand %p4009_p0, %p4006_p13 }
  0x94   : > { %4014 = shalt.err (!%p4011_p2)
}
  0x95   : > { %s4015_s2 = scalar_lea.vmem %s604_s19, 1024  ;;  %p4023_p4 = scmp.lt.s32.totalorder %s604_s19, %s604_s19 }
  0x96   : > { %p4016_p5 = scmp.ne.s32.totalorder %s604_s19, %s4015_s2  ;;  %p4024_p10 = scmp.lt.s32.totalorder %s4015_s2, %s4015_s2 }
  0x98   : > { %p4018_p7 = pnand %p4016_p5, %p4467_p8  ;;  %p4025_p11 = por %p4024_p10, %p4023_p4 }
  0x9a   : > { %p4019_p9 = pneg %p4018_p7 }
  0x9c   : > { %p4026_p12 = pnand %p4025_p11, %p4019_p9 }
  0x9e   : > { %4029 = shalt.err (!%p4026_p12)
}
  0x9f   : > { %3668 = dma.hbm_to_vmem [thread:$0]  (!%p4451_p6), %s5140_s13, 1024, %s604_s19, [#allocation18], %s5157_s18, %s5157_s18, %s5159_s16  }
  0xa0   : > { %s4301_s28 = smov [#allocation2]   ;;  %s4302_s26 = smov [#allocation10]  }
  0xa1   : > { %s487_s29 = sshll.u32 %s4301_s28, 4  ;;  %s526_s17 = sshll.u32 %s4302_s26, 4  ;;  %s488_s29 = int_to_ptr.vmem [resolvable:$true] %s487_s29  ;;  %s527_s17 = int_to_ptr.vmem [resolvable:$true] %s526_s17 }
  0xa2   : > { %s5184_s27 = sld [smem:[#allocation29_spill]] }
  0xa8   : > { %s4030_s2 = scalar_lea.hbm %s5184_s27, 128 }
  0xa9   : > { %p4031_p1 = scmp.ne.s32.totalorder %s5184_s27, %s4030_s2  ;;  %p4037_p0 = scmp.lt.u32.totalorder %s4030_s2, %s5184_s27 }
  0xab   : > { %p4033_p3 = pnand %p4031_p1, %p4467_p8 }
  0xad   : > { %p4034_p13 = pneg %p4033_p3 }
  0xaf   : > { %p4039_p2 = pnand %p4037_p0, %p4034_p13 }
  0xb1   : > { %4042 = shalt.err (!%p4039_p2)
}
  0xb2   : > { %s4043_s19 = scalar_lea.vmem %s488_s29, 128  ;;  %p4051_p4 = scmp.lt.s32.totalorder %s488_s29, %s488_s29 }
  0xb3   : > { %p4044_p5 = scmp.ne.s32.totalorder %s488_s29, %s4043_s19  ;;  %p4052_p10 = scmp.lt.s32.totalorder %s4043_s19, %s4043_s19 }
  0xb5   : > { %p4046_p7 = pnand %p4044_p5, %p4467_p8  ;;  %p4053_p11 = por %p4052_p10, %p4051_p4 }
  0xb7   : > { %p4047_p9 = pneg %p4046_p7 }
  0xb9   : > { %p4054_p12 = pnand %p4053_p11, %p4047_p9 }
  0xbb   : > { %4057 = shalt.err (!%p4054_p12)
}
  0xbc   : > { %3644 = dma.hbm_to_vmem [thread:$0]  (!%p4451_p6), %s5184_s27, 128, %s488_s29, [#allocation3], %s5157_s18, %s5157_s18, %s5159_s16  }
  0xbd   : > { %s5185_s4 = sld [smem:[#allocation33_spill]] }
  0xc3   : > { %s4058_s28 = scalar_lea.hbm %s5185_s4, 2048 }
  0xc4   : > { %p4059_p1 = scmp.ne.s32.totalorder %s5185_s4, %s4058_s28  ;;  %p4065_p0 = scmp.lt.u32.totalorder %s4058_s28, %s5185_s4 }
  0xc6   : > { %p4061_p3 = pnand %p4059_p1, %p4467_p8 }
  0xc8   : > { %p4062_p13 = pneg %p4061_p3 }
  0xca   : > { %p4067_p2 = pnand %p4065_p0, %p4062_p13 }
  0xcc   : > { %4070 = shalt.err (!%p4067_p2)
}
  0xcd   : > { %s4071_s11 = scalar_lea.vmem %s527_s17, 2048  ;;  %p4079_p4 = scmp.lt.s32.totalorder %s527_s17, %s527_s17 }
  0xce   : > { %p4072_p5 = scmp.ne.s32.totalorder %s527_s17, %s4071_s11  ;;  %p4080_p10 = scmp.lt.s32.totalorder %s4071_s11, %s4071_s11 }
  0xd0   : > { %p4074_p7 = pnand %p4072_p5, %p4467_p8  ;;  %p4081_p11 = por %p4080_p10, %p4079_p4 }
  0xd2   : > { %p4075_p9 = pneg %p4074_p7 }
  0xd4   : > { %p4082_p12 = pnand %p4081_p11, %p4075_p9 }
  0xd6   : > { %4085 = shalt.err (!%p4082_p12)
}
  0xd7   : > { %s5186_s29 = smov 8   ;;  %s5187_s19 = smov 128  }
  0xd8   : > { %3653 = dma.hbm_to_vmem [thread:$0]  (!%p4451_p6), %s5185_s4, 2048, %s527_s17, [#allocation9], %s5187_s19, %s5187_s19, %s5186_s29  }
  0xd9   : > { %s4303_s7 = smov [#allocation13]   ;;  %s4304_s28 = smov [#allocation16]  }
  0xda   : > { %s558_s12 = sshll.u32 %s4303_s7, 4  ;;  %s584_s26 = sshll.u32 %s4304_s28, 4  ;;  %s559_s12 = int_to_ptr.vmem [resolvable:$true] %s558_s12  ;;  %s585_s26 = int_to_ptr.vmem [resolvable:$true] %s584_s26 }
  0xdb   : > { %s4086_s2 = scalar_lea.hbm %s5135_s8, 1024 }
  0xdc   : > { %p4087_p1 = scmp.ne.s32.totalorder %s5135_s8, %s4086_s2  ;;  %p4093_p0 = scmp.lt.u32.totalorder %s4086_s2, %s5135_s8 }
  0xde   : > { %p4089_p3 = pnand %p4087_p1, %p4467_p8 }
  0xe0   : > { %p4090_p13 = pneg %p4089_p3 }
  0xe2   : > { %p4095_p2 = pnand %p4093_p0, %p4090_p13 }
  0xe4   : > { %4098 = shalt.err (!%p4095_p2)
}
  0xe5   : > { %s4099_s17 = scalar_lea.vmem %s559_s12, 1024  ;;  %p4107_p4 = scmp.lt.s32.totalorder %s559_s12, %s559_s12 }
  0xe6   : > { %p4100_p5 = scmp.ne.s32.totalorder %s559_s12, %s4099_s17  ;;  %p4108_p10 = scmp.lt.s32.totalorder %s4099_s17, %s4099_s17 }
  0xe8   : > { %p4102_p7 = pnand %p4100_p5, %p4467_p8  ;;  %p4109_p11 = por %p4108_p10, %p4107_p4 }
  0xea   : > { %p4103_p9 = pneg %p4102_p7 }
  0xec   : > { %p4110_p12 = pnand %p4109_p11, %p4103_p9 }
  0xee   : > { %4113 = shalt.err (!%p4110_p12)
}
  0xef   : > { %s5188_s18 = smov 4   ;;  %s5189_s29 = smov 64  }
  0xf0   : > { %3659 = dma.hbm_to_vmem [thread:$0]  (!%p4451_p6), %s5135_s8, 1024, %s559_s12, [#allocation12], %s5189_s29, %s5189_s29, %s5188_s18  }
  0xf1   : > { %s4114_s28 = scalar_lea.hbm %s5137_s10, 1024 }
  0xf2   : > { %p4115_p1 = scmp.ne.s32.totalorder %s5137_s10, %s4114_s28  ;;  %p4121_p0 = scmp.lt.u32.totalorder %s4114_s28, %s5137_s10 }
  0xf4   : > { %p4117_p3 = pnand %p4115_p1, %p4467_p8 }
  0xf6   : > { %p4118_p13 = pneg %p4117_p3 }
  0xf8   : > { %p4123_p2 = pnand %p4121_p0, %p4118_p13 }
  0xfa   : > { %4126 = shalt.err (!%p4123_p2)
}
  0xfb   : > { %s4127_s5 = scalar_lea.vmem %s585_s26, 1024  ;;  %p4135_p4 = scmp.lt.s32.totalorder %s585_s26, %s585_s26 }
  0xfc   : > { %p4128_p5 = scmp.ne.s32.totalorder %s585_s26, %s4127_s5  ;;  %p4136_p10 = scmp.lt.s32.totalorder %s4127_s5, %s4127_s5 }
  0xfe   : > { %p4130_p7 = pnand %p4128_p5, %p4467_p8  ;;  %p4137_p11 = por %p4136_p10, %p4135_p4 }
 0x100   : > { %p4131_p9 = pneg %p4130_p7 }
 0x102   : > { %p4138_p12 = pnand %p4137_p11, %p4131_p9 }
 0x104   : > { %4141 = shalt.err (!%p4138_p12)
}
 0x105   : > { %3665 = dma.hbm_to_vmem [thread:$0]  (!%p4451_p6), %s5137_s10, 1024, %s585_s26, [#allocation15], %s5189_s29, %s5189_s29, %s5188_s18  }
 0x106   : > { %s4305_s16 = smov [#allocation19]   ;;  %s4142_s28 = scalar_lea.hbm %s5142_s15, 1024 }
 0x107   : > { %s619_s19 = sshll.u32 %s4305_s16, 4  ;;  %p4143_p1 = scmp.ne.s32.totalorder %s5142_s15, %s4142_s28  ;;  %s620_s19 = int_to_ptr.vmem [resolvable:$true] %s619_s19 }
 0x108   : > { %p4149_p0 = scmp.lt.u32.totalorder %s4142_s28, %s5142_s15 }
 0x109   : > { %p4145_p3 = pnand %p4143_p1, %p4467_p8 }
 0x10b   : > { %p4146_p13 = pneg %p4145_p3 }
 0x10d   : > { %p4151_p2 = pnand %p4149_p0, %p4146_p13 }
 0x10f   : > { %4154 = shalt.err (!%p4151_p2)
}
 0x110   : > { %s4155_s26 = scalar_lea.vmem %s620_s19, 1024  ;;  %p4163_p4 = scmp.lt.s32.totalorder %s620_s19, %s620_s19 }
 0x111   : > { %p4156_p5 = scmp.ne.s32.totalorder %s620_s19, %s4155_s26  ;;  %p4164_p10 = scmp.lt.s32.totalorder %s4155_s26, %s4155_s26 }
 0x113   : > { %p4158_p7 = pnand %p4156_p5, %p4467_p8  ;;  %p4165_p11 = por %p4164_p10, %p4163_p4 }
 0x115   : > { %p4159_p9 = pneg %p4158_p7 }
 0x117   : > { %p4166_p12 = pnand %p4165_p11, %p4159_p9 }
 0x119   : > { %4169 = shalt.err (!%p4166_p12)
}
 0x11a   : > { %3671 = dma.hbm_to_vmem [thread:$0]  (!%p4451_p6), %s5142_s15, 1024, %s620_s19, [#allocation18], %s5189_s29, %s5189_s29, %s5188_s18  }
 0x11b   : > { %s3118_s3 = sadd.s32 4294967294, %s4290_s21   ;;  %s4692_s24 = sadd.s32 1, %s4290_s21  }
 0x11c   : > { %s65_s17 = ssub.s32 %s4290_s21, %s4692_s24  ;;  %s68_s16 = sadd.s32 1, %s4286_s20 }
 0x11d   : > { %p66_p8 = scmp.eq.s32.totalorder %s65_s17, 0  ;;  %p75_p1 = scmp.ne.s32.totalorder %s4286_s20, %s4282_s30 }
 0x11e   : > { %p76_p3 = scmp.eq.s32.totalorder %s4290_s21, 0  ;;  %p81_p13 = scmp.ne.s32.totalorder %s4282_s30, %s4278_s0 }
 0x11f   : > { %s4703_s6 = scalar_select %p66_p8, %s4286_s20, %s68_s16  }
 0x120   : > { %p4705_p0 = por %p76_p3, %p75_p1  ;;  %p5191_p2 = scmp.eq.s32.totalorder %s4435_s1, 0 }
 0x121   : > { %p462_p5 = scmp.eq.s32.totalorder %s4435_s1, 1  ;;  %p468_p7 = scmp.eq.s32.totalorder %s3118_s3, 1 }
 0x122   : > { %p4711_p6 = por %p5191_p2, %p81_p13  ;;  %p3690_p9 = scmp.lt.s32.totalorder %s4290_s21, 2 }
 0x123   : > { %s642_s29 = sand.u32 1, %s4290_s21   ;;  %p4718_p4 = por %p462_p5, %p75_p1 }
 0x124   : > { %p4722_p10 = por %p468_p7, %p81_p13  ;;  %s644_s25 = sand.u32 1, %s4286_s20  }
 0x125   : > { %s5193_s19 = scalar_select %p4718_p4, 1, 0 }
 0x126   : > { %s5194_s28 = scalar_select %p4722_p10, 1, 0 }
 0x127   : > { %s3131_s23 = sshll.u32 %s644_s25, 3  ;;  %s3132_s2 = sshll.u32 %s4290_s21, 7 }
 0x128   : > { %s5195_s5 = sld [smem:[#allocation30_spill]]  ;;  %s646_s3 = scalar_lea.vmem [#allocation5], %s3131_s23 }
 0x129   : > { %s653_s17 = sshll.u32 %s646_s3, 4  ;;  %p4735_p11 = pnand %p3690_p9, %p4705_p0  ;;  %s4739_s17 = int_to_ptr.vmem [resolvable:$true] %s653_s17 }
 0x12a   : > { %s643_s25 = scalar_lea.sflag [#allocation6], %s642_s29 }
 0x12b   : > { %p4172_p8 = pneg %p4735_p11 }
 0x12e   : > { %s4731_s12 = scalar_lea.hbm %s5195_s5, %s3132_s2  ;;  %s4175_s7 = scalar_lea.hbm %s5195_s5, 256 }
 0x12f   : > { %s4170_s4 = scalar_lea.hbm %s4731_s12, 128  ;;  %p4176_p13 = scmp.lt.u32.totalorder %s4731_s12, %s5195_s5 }
 0x130   : > { %p4171_p12 = scmp.ne.s32.totalorder %s4731_s12, %s4170_s4  ;;  %p4177_p0 = scmp.lt.u32.totalorder %s4175_s7, %s4170_s4 }
 0x131   : > { %p4179_p5 = scmp.lt.u32.totalorder %s4170_s4, %s4731_s12 }
 0x132   : > { %p4173_p1 = pnand %p4172_p8, %p4171_p12  ;;  %p4178_p2 = por %p4177_p0, %p4176_p13 }
 0x134   : > { %p4174_p3 = pneg %p4173_p1  ;;  %p4180_p7 = por %p4179_p5, %p4178_p2 }
 0x136   : > { %p4181_p9 = pnand %p4180_p7, %p4174_p3 }
 0x138   : > { %4184 = shalt.err (!%p4181_p9)
}
 0x139   : > { %s4185_s29 = scalar_lea.vmem %s4739_s17, 128  ;;  %s4306_s3 = smov [#allocation5]  }
 0x13a   : > { %p4186_p12 = scmp.ne.s32.totalorder %s4739_s17, %s4185_s29  ;;  %s4190_s23 = sshll.u32 %s4306_s3, 4  ;;  %s4191_s23 = int_to_ptr.vmem [resolvable:$false] %s4190_s23 }
 0x13b   : > { %s4192_s2 = scalar_lea.vmem %s4191_s23, 256  ;;  %p4193_p4 = scmp.lt.s32.totalorder %s4739_s17, %s4191_s23 }
 0x13c   : > { %p4188_p1 = pnand %p4186_p12, %p4172_p8  ;;  %p4194_p13 = scmp.lt.s32.totalorder %s4192_s2, %s4185_s29 }
 0x13e   : > { %p4189_p10 = pneg %p4188_p1  ;;  %p4195_p0 = por %p4194_p13, %p4193_p4 }
 0x140   : > { %p4196_p2 = pnand %p4195_p0, %p4189_p10 }
 0x142   : > { %4199 = shalt.err (!%p4196_p2)
}
 0x143   : > { %3675 = dma.hbm_to_vmem [thread:$0]  (!%p4735_p11), %s4731_s12, 128, %s4739_s17, %s643_s25  }
 0x144   : > { %p5197_p3 = scmp.ne.s32.totalorder %s5178_s22, 0 }
 0x145   : > { %p5198_p8 = scmp.eq.s32.totalorder (!%p5197_p3), %s4435_s1, 0 }
 0x146   : > { %662 = sbr.rel (%p5197_p3) target bundleno = 6935 (0x1b17), region = 96 }
 0x14d   : > { %4245 = dma.done.wait (%p5198_p8), [#allocation3], 128   ;;  %p5199_p5 = pmov %p5198_p8 }
 0x14e   : > { %s668_s4 = sand.u32 1, %s4435_s1   ;;  %s5162_s7 = sand.u32 1, %s4282_s30  }
 0x14f   : > { %4247 = vsyncadd (%p5199_p5), [#allocation3], 4294967168  ;;  %s4776_s16 = sshll.u32 %s5162_s7, 3  ;;  %s669_s12 = scalar_lea.sflag [#allocation6], %s668_s4 }
 0x150   : > { %s672_s17 = scalar_lea.vmem [#allocation5], %s4776_s16 }
 0x151   : > { %4249 = dma.done.wait (%p4711_p6), %s669_s12, 128  }
 0x152   : > { %4251 = vsyncadd (%p4711_p6), %s669_s12, 4294967168  ;;  %p5200_p4 = pmov %p5199_p5 }
 0x154   : > { %4253 = dma.done.wait (%p5200_p4), [#allocation6], 128   ;;  %p5201_p10 = pmov %p5200_p4 }
 0x155   : > { %p5202_p11 = pmov %p5200_p4 }
 0x156   : > { %4255 = vsyncadd (%p5201_p10), [#allocation6], 4294967168 }
 0x157   : > { %4257 = dma.done.wait (%p5202_p11), [#allocation9], 3072   ;;  %p5203_p7 = pmov %p5200_p4 }
 0x158   : > { %p5204_p9 = pmov %p5200_p4 }
 0x159   : > { %4259 = vsyncadd (%p5203_p7), [#allocation9], 4294964224 }
 0x15a   : > { %4261 = dma.done.wait (%p5204_p9), [#allocation12], 2048   ;;  %p5205_p12 = pmov %p5200_p4 }
 0x15b   : > { %p5206_p6 = pmov %p5200_p4 }
 0x15c   : > { %4263 = vsyncadd (%p5205_p12), [#allocation12], 4294965248 }
 0x15d   : > { %4265 = dma.done.wait (%p5206_p6), [#allocation15], 3072   ;;  %p5207_p1 = pmov %p5200_p4 }
 0x15f   : > { %4267 = vsyncadd (%p5207_p1), [#allocation15], 4294964224  ;;  %p5208_p13 = pmov %p5207_p1 }
 0x160   : > { %p5209_p0 = pmov %p5207_p1 }
 0x161   : > { %4269 = dma.done.wait (%p5208_p13), [#allocation18], 2048  }
 0x162   : > { %4271 = vsyncadd (%p5209_p0), [#allocation18], 4294965248  ;;  %v4307_v0 = vmov 0.0   ;;  %v4308_v1 = vmov 0   ;;  %vm4309_vm0 = vmmov 0   ;;  %v3762_v7 = vld [vmem:[#allocation8] sm:$0xff]   ;;  %v765_v44 = vlaneseq }
 0x163   : > { %3357 = vmatprep.subr.bf16.mxu0 %v4307_v0  ;;  %1121 = vmatprep.mubr.bf16.mxu1 %v4308_v1  ;;  %v3754_v2 = vld [vmem:[#allocation10 + $0x4] ss:$8 sps:$4 sm:$0xff]   ;;  %v3756_v3 = vld [vmem:[#allocation10] ss:$8 sps:$4 sm:$0xff]   ;;  %v3757_v4 = vld [vmem:[#allocation10 + $0x14] ss:$8 sps:$4 sm:$0xff]  }
 0x164   : > { %3373 = vmatprep.mubr.msk.bf16.mxu0 %vm4309_vm0, %v4307_v0  ;;  %1089 = vmatprep.subr.bf16.mxu1 %v3754_v2  ;;  %v3759_v5 = vld [vmem:[#allocation10 + $0x10] ss:$8 sps:$4 sm:$0xff]   ;;  %v3760_v6 = vld [vmem:[#allocation10 + $0x24] ss:$8 sps:$4 sm:$0xff]   ;;  %v3763_v9 = vld [vmem:[#allocation10 + $0x20] ss:$8 sps:$4 sm:$0xff]  }
 0x165   : > { %1090 = vmatpush1.bf16.msra.mxu1 %v3756_v3  ;;  %3358 = vmatpush3.bf16.msra.mxu0 %v3762_v7  ;;  %v3766_v8 = vld [vmem:[#allocation8 + $0x8] sm:$0xff]   ;;  %v3764_v10 = vld [vmem:[#allocation10 + $0x34] ss:$8 sps:$4 sm:$0xff]   ;;  %v3767_v12 = vld [vmem:[#allocation10 + $0x30] ss:$8 sps:$4 sm:$0xff]   ;;  %vm1135_vm1 = vcmask 261120  }
 0x166   : > { %1091 = vmatprep.subr.bf16.mxu1 %v3757_v4  ;;  %3359 = vmatprep.subr.bf16.mxu0 %v4307_v0  ;;  %v3770_v11 = vld [vmem:[#allocation8 + $0x10] sm:$0xff]   ;;  %v3768_v13 = vld [vmem:[#allocation10 + $0x44] ss:$8 sps:$4 sm:$0xff]   ;;  %v3774_v14 = vld [vmem:[#allocation8 + $0x18] sm:$0xff]   ;;  %s4310_s22 = smov 96   ;;  %s3146_s18 = sshll.u32 %s4435_s1, 3 }
 0x167   : > { %v3771_v15 = vld [vmem:[#allocation10 + $0x40] ss:$8 sps:$4 sm:$0xff]   ;;  %v3772_v16 = vld [vmem:[#allocation10 + $0x54] ss:$8 sps:$4 sm:$0xff]   ;;  %v3775_v18 = vld [vmem:[#allocation10 + $0x50] ss:$8 sps:$4 sm:$0xff]   ;;  %v767_v46 = vstv %s3146_s18 }
 0x168   : > { %v3778_v17 = vld [vmem:[#allocation8 + $0x20] sm:$0xff]   ;;  %v3782_v20 = vld [vmem:[#allocation8 + $0x28] sm:$0xff]   ;;  %v3780_v22 = vld [vmem:[#allocation10 + $0x74] ss:$8 sps:$4 sm:$0xff]   ;;  %v766_v45 = vshrl.u32 %v765_v44, 7  ;;  %v770_v48 = vand.u32 127, %v765_v44 }
 0x169   : > { %1092 = vmatpush1.bf16.msra.mxu1 %v3759_v5  ;;  %3360 = vmatpush3.bf16.msra.mxu0 %v3766_v8  ;;  %v3776_v19 = vld [vmem:[#allocation10 + $0x64] ss:$8 sps:$4 sm:$0xff]   ;;  %v3779_v21 = vld [vmem:[#allocation10 + $0x60] ss:$8 sps:$4 sm:$0xff]   ;;  %v3785_v23 = vld [vmem:[#allocation8 + $0x30] sm:$0xff]   ;;  %vm1182_vm3 = vcmask 130048  }
 0x16a   : > { %1093 = vmatprep.subr.bf16.mxu1 %v3760_v6  ;;  %3361 = vmatprep.subr.bf16.mxu0 %v4307_v0  ;;  %v3783_v24 = vld [vmem:[#allocation10 + $0x70] ss:$8 sps:$4 sm:$0xff]   ;;  %v768_v47 = vadd.s32 %v767_v46, %v766_v45  ;;  %s4311_s25 = smov 64   ;;  %s4312_s11 = smov 32  }
 0x16b   : > { %v3784_v25 = vld [vmem:[#allocation7] sm:$0xff]   ;;  %v4815_v27 = vld [vmem:[%s672_s17] sm:$0xff]  ;;  %s5210_s3 = sld [smem:[#allocation35_spill]]  ;;  %s5211_s4 = sld [smem:[#allocation36_spill]] }
 0x16c   : > { %v3786_v26 = vld [vmem:[#allocation8 + $0x38] sm:$0xff]   ;;  %v914_v28 = vpack.c.bf16 %v4815_v27, %v4815_v27  ;;  %vm771_vm2 = vcmp.gt.s32.totalorder %v770_v48, %v768_v47  ;;  %s3262_s26 = sshll.u32 %s4435_s1, 7  ;;  %s762_s29 = scalar_lea.vmem [#allocation20], %s4776_s16 }
 0x16d   : > { %1094 = vmatpush1.bf16.msra.mxu1 %v3763_v9  ;;  %3362 = vmatpush3.bf16.msra.mxu0 %v3770_v11  ;;  %v4852_v49 = vsel %vm771_vm2, -1e+09, %v4307_v0  ;;  %s5219_s12 = sand.u32 1, %s4282_s30   ;;  %p5220_p3 = scmp.ne.s32.totalorder %s5193_s19, 0 }
 0x16e   : > { %1095 = vmatprep.subr.bf16.mxu1 %v3764_v10  ;;  %3363 = vmatprep.subr.bf16.mxu0 %v4307_v0  ;;  %s2938_s17 = scalar_lea.sflag [#allocation4], %s5219_s12  ;;  %s4313_s1 = smov [#allocation20]  }
 0x16f   : > { %s4204_s16 = sshll.u32 %s4313_s1, 4  ;;  %s4205_s16 = int_to_ptr.vmem [resolvable:$false] %s4204_s16 }
 0x170   : > { %s4206_s18 = scalar_lea.vmem %s4205_s16, 256 }
 0x171   : > { %1096 = vmatpush1.bf16.msra.mxu1 %v3767_v12  ;;  %3364 = vmatpush3.bf16.msra.mxu0 %v3774_v14  ;;  %v3789_v14 = vld [vmem:[#allocation11 + $0x10] sm:$0xff]  }
 0x172   : > { %1097 = vmatprep.subr.bf16.mxu1 %v3768_v13  ;;  %3365 = vmatprep.subr.bf16.mxu0 %v4307_v0 }
 0x175   : > { %1098 = vmatpush1.bf16.msra.mxu1 %v3771_v15  ;;  %3366 = vmatpush3.bf16.msra.mxu0 %v3778_v17  ;;  %v3790_v15 = vld [vmem:[#allocation11 + $0x18] sm:$0xff]  }
 0x176   : > { %1099 = vmatprep.subr.bf16.mxu1 %v3772_v16  ;;  %3367 = vmatprep.subr.bf16.mxu0 %v4307_v0 }
 0x179   : > { %1100 = vmatpush1.bf16.msra.mxu1 %v3775_v18  ;;  %3368 = vmatpush3.bf16.msra.mxu0 %v3782_v20  ;;  %v3787_v20 = vld [vmem:[#allocation11] sm:$0xff]  }
 0x17a   : > { %1101 = vmatprep.subr.bf16.mxu1 %v3776_v19  ;;  %3369 = vmatprep.subr.bf16.mxu0 %v4307_v0 }
 0x17d   : > { %1102 = vmatpush1.bf16.msra.mxu1 %v3779_v21  ;;  %3370 = vmatpush3.bf16.msra.mxu0 %v3785_v23 }
 0x17e   : > { %1103 = vmatprep.subr.bf16.mxu1 %v3780_v22  ;;  %3371 = vmatprep.subr.bf16.mxu0 %v4307_v0  ;;  %v3788_v22 = vld [vmem:[#allocation11 + $0x8] sm:$0xff]  }
 0x181   : > { %1104 = vmatpush1.bf16.msra.mxu1 %v3783_v24  ;;  %3372 = vmatpush3.bf16.msra.mxu0 %v3786_v26 }
 0x182   : > { %3383 = vmatprep.subr.bf16.mxu1 %v4307_v0  ;;  %3377 = vmatprep.subr.bf16.mxu0 %v4307_v0 }
 0x184   : > { %1122 = vmatmul.mubr.bf16.vlgmr.msra.gmra.mrb[0].mxu1 %v3784_v25  ;;  %3374 = vmatmul.mubr.bf16.vlgmr.msra.gmra.mrb[0].mxu0 %v914_v28 }
 0x185   : > { %3385 = vmatprep.mubr.msk.bf16.mxu1 %vm4309_vm0, %v4307_v0  ;;  %3379 = vmatprep.mubr.msk.bf16.mxu0 %vm4309_vm0, %v4307_v0 }
 0x257   : > { %v1123_v29 = vpop.f32.mrb[0].mxu1  ;;  %v997_v34 = vpop.f32.mrb[0].mxu0 }
 0x258   : > { %v1125_v30 = vpop.f32.mrb[1].mxu1  ;;  %v3375_v36 = vpop.f32.mrb[1].mxu0  ;;  %v4834_v38 = vpack.c.bf16 %v997_v34, %v997_v34 }
 0x259   : > { %v1127_v31 = vpop.f32.mrb[2].mxu1  ;;  %v1000_v39 = vpop.f32.mrb[2].mxu0 }
 0x25a   : > { %v4826_v32 = vpack.c.bf16 %v1127_v31, %v1123_v29  ;;  %v1129_v33 = vpop.f32.mrb[3].mxu1  ;;  %v3376_v40 = vpop.f32.mrb[3].mxu0 }
 0x25b   : > { %v4828_v35 = vpack.c.bf16 %v1129_v33, %v1125_v30 }
 0x25c   : > { %1243 = vrot.lane.b32.xlu0 %v4826_v32, %s4310_s22  ;;  %v1140_v37 = vsel %vm1135_vm1, %v4826_v32, 0 }
 0x25d   : > { %3378 = vmatpush3.bf16.xpose.msra.mxu0 %v1140_v37  ;;  %3384 = vmatpush3.bf16.msra.mxu1 %v4828_v35 }
 0x25e   : > { %3389 = vmatprep.subr.bf16.mxu0 %v4307_v0  ;;  %3395 = vmatprep.subr.bf16.mxu1 %v4307_v0 }
 0x260   : > { %1240 = vrot.lane.b32.xlu0 %v4834_v38, %s4310_s22 }
 0x264   : > { %3380 = vmatmul.mubr.msk.bf16.vlgmr.msra.gmra.mrb[4].mxu0 %vm1135_vm1, %v4834_v38 }
 0x265   : > { %3391 = vmatprep.mubr.msk.bf16.mxu0 %vm4309_vm0, %v4307_v0 }
 0x2ce   : > { %v1244_v41 = vpop.permute.xlu0 %1243 }
 0x2cf   : > { %v1249_v42 = vsel %vm1135_vm1, %v1244_v41, 0 }
 0x2d0   : > { %3390 = vmatpush3.bf16.xpose.msra.mxu0 %v1249_v42 }
 0x2d1   : > { %3401 = vmatprep.subr.bf16.mxu0 %v4307_v0 }
 0x2d2   : > { %v1241_v43 = vpop.permute.xlu0 %1240 }
 0x2d7   : > { %3392 = vmatmul.mubr.msk.bf16.vlgmr.msra.gmra.mrb[8].mxu0 %vm1135_vm1, %v1241_v43 }
 0x2d8   : > { %3405 = vmatprep.mubr.msk.bf16.mxu0 %vm4309_vm0, %v4307_v0  ;;  %3402 = vmatpush3.bf16.msra.mxu0 %v3789_v14 }
 0x2d9   : > { %3403 = vmatprep.subr.bf16.mxu0 %v4307_v0 }
 0x2dc   : > { %3404 = vmatpush3.bf16.msra.mxu0 %v3790_v15 }
 0x2dd   : > { %3417 = vmatprep.subr.bf16.mxu0 %v4307_v0 }
 0x337   : > { %v1176_v50 = vpop.f32.mrb[4].mxu0 }
 0x338   : > { %v1177_v51 = vadd.f32 %v1176_v50, %v4852_v49  ;;  %v3381_v52 = vpop.f32.mrb[5].mxu0 }
 0x339   : > { %v1179_v53 = vpop.f32.mrb[6].mxu0 }
 0x33a   : > { %v3382_v54 = vpop.f32.mrb[7].mxu0  ;;  %v1183_v55 = vsel %vm1182_vm3, %v1177_v51, -inf }
 0x33b   : > { %1184 = vmax.xlane.f32.xlu1 %v1183_v55 }
 0x3aa   : > { %v1285_v56 = vpop.f32.mrb[8].mxu0 }
 0x3ab   : > { %v1286_v57 = vadd.f32 %v1285_v56, %v4852_v49  ;;  %v3393_v58 = vpop.f32.mrb[9].mxu0 }
 0x3ac   : > { %v1288_v59 = vpop.f32.mrb[10].mxu0 }
 0x3ad   : > { %v3394_v60 = vpop.f32.mrb[11].mxu0  ;;  %v1291_v61 = vsel %vm1182_vm3, %v1286_v57, -inf }
 0x3ae   : > { %1292 = vmax.xlane.f32.xlu1 %v1291_v61 }
 0x3c8   : > { %v1185_v62 = vpop.xlane.xlu1 %1184 }
 0x3c9   : > { %v1186_v63 = vsub.f32 %v1177_v51, %v1185_v62  ;;  %v3791_v62 = vld [vmem:[#allocation11 + $0x20] sm:$0xff]  }
 0x3cb   : > { %v1187_v2 = vmul.f32 1.442695, %v1186_v63 }
 0x3cd   : > { %3852 = vpow2.f32 %v1187_v2 }
 0x3d7   : > { %v3853_v3 = vpop.eup %3852 }
 0x3d8   : > { %v1189_v4 = vsel %vm1182_vm3, %v3853_v3, 0.0 }
 0x3d9   : > { %1190 = vadd.xlane.f32.xlu0 %v1189_v4 }
 0x3ef   : > { %1523 = vrot.lane.b32.xlu0 %v4828_v35, %s4311_s25 }
 0x43b   : > { %v1293_v5 = vpop.xlane.xlu1 %1292 }
 0x43c   : > { %v1294_v6 = vsub.f32 %v1286_v57, %v1293_v5 }
 0x43e   : > { %v1295_v7 = vmul.f32 1.442695, %v1294_v6 }
 0x440   : > { %3854 = vpow2.f32 %v1295_v7 }
 0x44a   : > { %v3855_v8 = vpop.eup %3854 }
 0x44b   : > { %v1297_v9 = vsel %vm1182_vm3, %v3855_v8, 0.0 }
 0x44c   : > { %1298 = vadd.xlane.f32.xlu1 %v1297_v9 }
 0x45d   : > { %1304 = vrot.lane.b32.xlu1 %v4828_v35, %s4310_s22 }
 0x461   : > { %1463 = vrot.lane.b32.xlu1 %v4826_v32, %s4311_s25 }
 0x465   : > { %1461 = vrot.lane.b32.xlu1 %v4834_v38, %s4311_s25 }
 0x466   : > { %v1191_v10 = vpop.xlane.xlu0 %1190 }
 0x467   : > { %3856 = vrcp.f32 %v1191_v10 }
 0x46a   : > { %v1524_v28 = vpop.permute.xlu0 %1523 }
 0x471   : > { %v3857_v11 = vpop.eup %3856 }
 0x472   : > { %v1193_v12 = vmul.f32 %v3857_v11, %v3853_v3 }
 0x474   : > { %v1194_v13 = vpack.c.bf16 %v1193_v12, %v1193_v12 }
 0x476   : > { %3386 = vmatmul.mubr.msk.bf16.vlgmr.msra.gmra.mrb[4].mxu1 %vm1182_vm3, %v1194_v13 }
 0x477   : > { %3397 = vmatprep.mubr.msk.bf16.mxu1 %vm4309_vm0, %v4307_v0 }
 0x4d9   : > { %v1299_v16 = vpop.xlane.xlu1 %1298 }
 0x4da   : > { %3858 = vrcp.f32 %v1299_v16 }
 0x4dd   : > { %v1305_v17 = vpop.permute.xlu1 %1304 }
 0x4de   : > { %3396 = vmatpush3.bf16.msra.mxu1 %v1305_v17 }
 0x4df   : > { %3409 = vmatprep.subr.bf16.mxu1 %v4307_v0 }
 0x4e1   : > { %v1464_v30 = vpop.permute.xlu1 %1463 }
 0x4e2   : > { %v1469_v37 = vsel %vm1135_vm1, %v1464_v30, 0 }
 0x4e4   : > { %v3859_v18 = vpop.eup %3858 }
 0x4e5   : > { %v1301_v19 = vmul.f32 %v3859_v18, %v3855_v8  ;;  %v1462_v40 = vpop.permute.xlu1 %1461 }
 0x4e7   : > { %v1302_v21 = vpack.c.bf16 %v1301_v19, %v1301_v19 }
 0x4e9   : > { %3398 = vmatmul.mubr.msk.bf16.vlgmr.msra.gmra.mrb[8].mxu1 %vm1182_vm3, %v1302_v21 }
 0x4ea   : > { %3410 = vmatpush3.bf16.msra.mxu1 %v3787_v20  ;;  %3413 = vmatprep.mubr.msk.bf16.mxu1 %vm4309_vm0, %v4307_v0 }
 0x4eb   : > { %3411 = vmatprep.subr.bf16.mxu1 %v4307_v0 }
 0x4ee   : > { %3412 = vmatpush3.bf16.msra.mxu1 %v3788_v22 }
 0x4ef   : > { %3423 = vmatprep.subr.bf16.mxu1 %v4307_v0 }
 0x549   : > { %v1232_v23 = vpop.f32.mrb[4].mxu1 }
 0x54a   : > { %v1238_v24 = vpack.c.bf16 %v1232_v23, %v1232_v23  ;;  %v3387_v25 = vpop.f32.mrb[5].mxu1  ;;  %v3793_v23 = vld [vmem:[#allocation11 + $0x30] sm:$0xff]  }
 0x54b   : > { %v1235_v26 = vpop.f32.mrb[6].mxu1 }
 0x54c   : > { %v3388_v29 = vpop.f32.mrb[7].mxu1  ;;  %3414 = vmatmul.mubr.msk.bf16.vlgmr.msra.gmra.mrb[12].mxu1 %vm1135_vm1, %v1238_v24 }
 0x54d   : > { %3424 = vmatpush3.bf16.msra.mxu1 %v1524_v28  ;;  %3425 = vmatprep.mubr.msk.bf16.mxu1 %vm4309_vm0, %v4307_v0 }
 0x54e   : > { %3437 = vmatprep.subr.bf16.mxu1 %v4307_v0 }
 0x5bc   : > { %v1344_v31 = vpop.f32.mrb[8].mxu1 }
 0x5bd   : > { %v1350_v33 = vpack.c.bf16 %v1344_v31, %v1344_v31  ;;  %v3399_v34 = vpop.f32.mrb[9].mxu1 }
 0x5be   : > { %v1347_v36 = vpop.f32.mrb[10].mxu1 }
 0x5bf   : > { %v3400_v39 = vpop.f32.mrb[11].mxu1  ;;  %3406 = vmatmul.mubr.msk.bf16.vlgmr.msra.gmra.mrb[12].mxu0 %vm1135_vm1, %v1350_v33 }
 0x5c0   : > { %3418 = vmatpush3.bf16.xpose.msra.mxu0 %v1469_v37  ;;  %3419 = vmatprep.mubr.msk.bf16.mxu0 %vm4309_vm0, %v4307_v0 }
 0x5c1   : > { %3429 = vmatprep.subr.bf16.mxu0 %v4307_v0 }
 0x5c7   : > { %3420 = vmatmul.mubr.msk.bf16.vlgmr.msra.gmra.mrb[16].mxu0 %vm1135_vm1, %v1462_v40 }
 0x5c8   : > { %3433 = vmatprep.mubr.msk.bf16.mxu0 %vm4309_vm0, %v4307_v0  ;;  %3430 = vmatpush3.bf16.msra.mxu0 %v3791_v62 }
 0x5c9   : > { %3431 = vmatprep.subr.bf16.mxu0 %v4307_v0 }
 0x61f   : > { %v1455_v41 = vpop.f32.mrb[12].mxu1 }
 0x620   : > { %v3415_v42 = vpop.f32.mrb[13].mxu1 }
 0x621   : > { %v1458_v43 = vpop.f32.mrb[14].mxu1 }
 0x622   : > { %v3416_v44 = vpop.f32.mrb[15].mxu1 }
 0x692   : > { %v1400_v45 = vpop.f32.mrb[12].mxu0 }
 0x693   : > { %v4891_v46 = vadd.f32 %v1455_v41, %v1400_v45  ;;  %v3407_v47 = vpop.f32.mrb[13].mxu0 }
 0x694   : > { %v1403_v48 = vpop.f32.mrb[14].mxu0 }
 0x695   : > { %v3408_v50 = vpop.f32.mrb[15].mxu0  ;;  %v3795_v48 = vld [vmem:[#allocation14] ss:$8 sps:$4 sm:$0xff]  }
 0x696   : > { %v3797_v50 = vld [vmem:[#allocation14 + $0x4] ss:$8 sps:$4 sm:$0xff]  }
 0x69a   : > { %v1505_v51 = vpop.f32.mrb[16].mxu0 }
 0x69b   : > { %v1506_v52 = vadd.f32 %v1505_v51, %v4852_v49  ;;  %v3421_v53 = vpop.f32.mrb[17].mxu0  ;;  %v3800_v51 = vld [vmem:[#allocation14 + $0x14] ss:$8 sps:$4 sm:$0xff]  }
 0x69c   : > { %v1508_v54 = vpop.f32.mrb[18].mxu0  ;;  %v3798_v53 = vld [vmem:[#allocation14 + $0x10] ss:$8 sps:$4 sm:$0xff]  }
 0x69d   : > { %v3422_v55 = vpop.f32.mrb[19].mxu0  ;;  %v1511_v56 = vsel %vm1182_vm3, %v1506_v52, -inf  ;;  %v3803_v54 = vld [vmem:[#allocation14 + $0x24] ss:$8 sps:$4 sm:$0xff]  }
 0x69e   : > { %1512 = vmax.xlane.f32.xlu1 %v1511_v56  ;;  %v3811_v55 = vld [vmem:[#allocation13 + $0x8] sm:$0xff]   ;;  %v3806_v56 = vld [vmem:[#allocation14 + $0x34] ss:$8 sps:$4 sm:$0xff]  }
 0x72b   : > { %v1513_v57 = vpop.xlane.xlu1 %1512 }
 0x72c   : > { %v1514_v58 = vsub.f32 %v1506_v52, %v1513_v57  ;;  %v3807_v52 = vld [vmem:[#allocation13] sm:$0xff]  }
 0x72d   : > { %v3810_v57 = vld [vmem:[#allocation14 + $0x44] ss:$8 sps:$4 sm:$0xff]  }
 0x72e   : > { %v1515_v59 = vmul.f32 1.442695, %v1514_v58  ;;  %v3808_v58 = vld [vmem:[#allocation14 + $0x40] ss:$8 sps:$4 sm:$0xff]  }
 0x730   : > { %3860 = vpow2.f32 %v1515_v59  ;;  %v3814_v59 = vld [vmem:[#allocation14 + $0x54] ss:$8 sps:$4 sm:$0xff]  }
 0x73a   : > { %v3861_v60 = vpop.eup %3860 }
 0x73b   : > { %v1517_v61 = vsel %vm1182_vm3, %v3861_v60, 0.0 }
 0x73c   : > { %1518 = vadd.xlane.f32.xlu0 %v1517_v61 }
 0x752   : > { %1628 = vrot.lane.b32.xlu0 %v4826_v32, %s4312_s11 }
 0x756   : > { %1626 = vrot.lane.b32.xlu0 %v4834_v38, %s4312_s11  ;;  %v3792_v38 = vld [vmem:[#allocation11 + $0x28] sm:$0xff]  }
 0x757   : > { %3432 = vmatpush3.bf16.msra.mxu0 %v3792_v38  ;;  %v3820_v38 = vld [vmem:[#allocation14 + $0x70] ss:$8 sps:$4 sm:$0xff]  }
 0x758   : > { %3443 = vmatprep.subr.bf16.mxu0 %v4307_v0 }
 0x7c9   : > { %v1519_v63 = vpop.xlane.xlu0 %1518 }
 0x7ca   : > { %3862 = vrcp.f32 %v1519_v63 }
 0x7cd   : > { %v1629_v4 = vpop.permute.xlu0 %1628 }
 0x7ce   : > { %v1634_v6 = vsel %vm1135_vm1, %v1629_v4, 0  ;;  %v3818_v4 = vld [vmem:[#allocation14 + $0x64] ss:$8 sps:$4 sm:$0xff]  }
 0x7d1   : > { %v1627_v32 = vpop.permute.xlu0 %1626 }
 0x7d4   : > { %v3863_v2 = vpop.eup %3862 }
 0x7d5   : > { %v1521_v3 = vmul.f32 %v3863_v2, %v3861_v60  ;;  %v3812_v60 = vld [vmem:[#allocation14 + $0x50] ss:$8 sps:$4 sm:$0xff]  }
 0x7d7   : > { %v1522_v5 = vpack.c.bf16 %v1521_v3, %v1521_v3  ;;  %v3815_v3 = vld [vmem:[#allocation13 + $0x10] sm:$0xff]  }
 0x7d9   : > { %3426 = vmatmul.mubr.msk.bf16.vlgmr.msra.gmra.mrb[16].mxu1 %vm1182_vm3, %v1522_v5  ;;  %v3816_v5 = vld [vmem:[#allocation14 + $0x60] ss:$8 sps:$4 sm:$0xff]  }
 0x7da   : > { %3438 = vmatpush3.bf16.xpose.msra.mxu1 %v1634_v6  ;;  %3439 = vmatprep.mubr.msk.bf16.mxu1 %vm4309_vm0, %v4307_v0  ;;  %v3819_v6 = vld [vmem:[#allocation13 + $0x18] sm:$0xff]  }
 0x7db   : > { %3449 = vmatprep.subr.bf16.mxu1 %v4307_v0 }
 0x7e1   : > { %3440 = vmatmul.mubr.msk.bf16.vlgmr.msra.gmra.mrb[20].mxu1 %vm1135_vm1, %v1627_v32  ;;  %v3822_v32 = vld [vmem:[#allocation14 + $0x74] ss:$8 sps:$4 sm:$0xff]  }
 0x7e2   : > { %3453 = vmatprep.mubr.msk.bf16.mxu1 %vm4309_vm0, %v4307_v0  ;;  %3450 = vmatpush3.bf16.msra.mxu1 %v3793_v23 }
 0x7e3   : > { %3451 = vmatprep.subr.bf16.mxu1 %v4307_v0 }
 0x8ac   : > { %v1563_v7 = vpop.f32.mrb[16].mxu1 }
 0x8ad   : > { %v1569_v8 = vpack.c.bf16 %v1563_v7, %v1563_v7  ;;  %v3427_v9 = vpop.f32.mrb[17].mxu1  ;;  %v3823_v7 = vld [vmem:[#allocation13 + $0x20] sm:$0xff]  }
 0x8ae   : > { %v1566_v10 = vpop.f32.mrb[18].mxu1  ;;  %v3825_v9 = vld [vmem:[#allocation13 + $0x28] sm:$0xff]  }
 0x8af   : > { %v3428_v11 = vpop.f32.mrb[19].mxu1  ;;  %3434 = vmatmul.mubr.msk.bf16.vlgmr.msra.gmra.mrb[20].mxu0 %vm1135_vm1, %v1569_v8  ;;  %v3824_v8 = vld [vmem:[#allocation2] sm:$0xff]   ;;  %v3826_v10 = vld [vmem:[#allocation13 + $0x30] sm:$0xff]  }
 0x8b0   : > { %3445 = vmatprep.mubr.msk.bf16.mxu0 %vm4309_vm0, %v4307_v0  ;;  %v3827_v11 = vld [vmem:[#allocation13 + $0x38] sm:$0xff]  }
 0x8b4   : > { %v1670_v12 = vpop.f32.mrb[20].mxu1 }
 0x8b5   : > { %v1671_v13 = vadd.f32 %v1670_v12, %v4852_v49  ;;  %v3441_v14 = vpop.f32.mrb[21].mxu1 }
 0x8b6   : > { %v1673_v15 = vpop.f32.mrb[22].mxu1 }
 0x8b7   : > { %v3442_v16 = vpop.f32.mrb[23].mxu1  ;;  %v1676_v17 = vsel %vm1182_vm3, %v1671_v13, -inf }
 0x8b8   : > { %1677 = vmax.xlane.f32.xlu0 %v1676_v17  ;;  %v3192_v16 = vld [vmem:[%s5210_s3] ss:$0 sm:$0xff]  ;;  %s5214_s3 = sld [smem:[#allocation39_spill]] }
 0x945   : > { %v1678_v18 = vpop.xlane.xlu0 %1677 }
 0x946   : > { %v1679_v19 = vsub.f32 %v1671_v13, %v1678_v18  ;;  %v3193_v18 = vld [vmem:[%s5211_s4] ss:$0 sm:$0xff]  ;;  %s5215_s4 = sld [smem:[#allocation40_spill]] }
 0x948   : > { %v1680_v20 = vmul.f32 1.442695, %v1679_v19 }
 0x94a   : > { %3864 = vpow2.f32 %v1680_v20 }
 0x954   : > { %v3865_v21 = vpop.eup %3864 }
 0x955   : > { %v1682_v22 = vsel %vm1182_vm3, %v3865_v21, 0.0 }
 0x956   : > { %1683 = vadd.xlane.f32.xlu1 %v1682_v22 }
 0x967   : > { %1688 = vrot.lane.b32.xlu1 %v4828_v35, %s4312_s11  ;;  %v3794_v35 = vld [vmem:[#allocation11 + $0x38] sm:$0xff]  }
 0x968   : > { %3452 = vmatpush3.bf16.msra.mxu1 %v3794_v35 }
 0x969   : > { %1993 = vmatprep.subr.bf16.mxu1 %v3797_v50 }
 0x982   : > { %v1619_v49 = vpop.f32.mrb[20].mxu0 }
 0x983   : > { %v1625_v24 = vadd.f32 %v1619_v49, %v4891_v46  ;;  %v3435_v25 = vpop.f32.mrb[21].mxu0 }
 0x984   : > { %v1622_v26 = vpop.f32.mrb[22].mxu0 }
 0x985   : > { %v3436_v28 = vpop.f32.mrb[23].mxu0 }
 0x9e3   : > { %v1684_v29 = vpop.xlane.xlu1 %1683 }
 0x9e4   : > { %3866 = vrcp.f32 %v1684_v29 }
 0x9e7   : > { %v1689_v30 = vpop.permute.xlu1 %1688 }
 0x9e8   : > { %3444 = vmatpush3.bf16.msra.mxu0 %v1689_v30 }
 0x9e9   : > { %3457 = vmatprep.subr.bf16.mxu0 %v4307_v0 }
 0x9ee   : > { %v3867_v31 = vpop.eup %3866 }
 0x9ef   : > { %v1686_v33 = vmul.f32 %v3867_v31, %v3865_v21 }
 0x9f1   : > { %v1687_v34 = vpack.c.bf16 %v1686_v33, %v1686_v33 }
 0x9f3   : > { %3446 = vmatmul.mubr.msk.bf16.vlgmr.msra.gmra.mrb[24].mxu0 %vm1182_vm3, %v1687_v34 }
 0x9f4   : > { %3473 = vmatprep.mubr.msk.bf16.mxu0 %vm4309_vm0, %v4307_v0  ;;  %3458 = vmatpush3.bf16.msra.mxu0 %v3807_v52 }
 0x9f5   : > { %3459 = vmatprep.subr.bf16.mxu0 %v4307_v0 }
 0x9f8   : > { %3460 = vmatpush3.bf16.msra.mxu0 %v3811_v55 }
 0x9f9   : > { %3461 = vmatprep.subr.bf16.mxu0 %v4307_v0 }
 0x9fc   : > { %3462 = vmatpush3.bf16.msra.mxu0 %v3815_v3 }
 0x9fd   : > { %3463 = vmatprep.subr.bf16.mxu0 %v4307_v0 }
 0xa00   : > { %3464 = vmatpush3.bf16.msra.mxu0 %v3819_v6  ;;  %v3828_v6 = vld [vmem:[#allocation16] sm:$0xff]  }
 0xa01   : > { %3465 = vmatprep.subr.bf16.mxu0 %v4307_v0 }
 0xa04   : > { %3466 = vmatpush3.bf16.msra.mxu0 %v3823_v7 }
 0xa05   : > { %3467 = vmatprep.subr.bf16.mxu0 %v4307_v0 }
 0xa08   : > { %3468 = vmatpush3.bf16.msra.mxu0 %v3825_v9 }
 0xa09   : > { %3469 = vmatprep.subr.bf16.mxu0 %v4307_v0 }
 0xa0c   : > { %3470 = vmatpush3.bf16.msra.mxu0 %v3826_v10 }
 0xa0d   : > { %3471 = vmatprep.subr.bf16.mxu0 %v4307_v0 }
 0xa10   : > { %3472 = vmatpush3.bf16.msra.mxu0 %v3827_v11 }
 0xa11   : > { %3477 = vmatprep.subr.bf16.mxu0 %v4307_v0 }
 0xac6   : > { %v1728_v36 = vpop.f32.mrb[24].mxu0 }
 0xac7   : > { %v1734_v37 = vpack.c.bf16 %v1728_v36, %v1728_v36  ;;  %v3447_v39 = vpop.f32.mrb[25].mxu0 }
 0xac8   : > { %v1731_v40 = vpop.f32.mrb[26].mxu0 }
 0xac9   : > { %v3448_v41 = vpop.f32.mrb[27].mxu0  ;;  %3454 = vmatmul.mubr.msk.bf16.vlgmr.msra.gmra.mrb[24].mxu1 %vm1135_vm1, %v1734_v37 }
 0xaca   : > { %2025 = vmatprep.mubr.bf16.mxu1 %v4308_v1  ;;  %1994 = vmatpush1.bf16.msra.mxu1 %v3795_v48  ;;  %v3801_v1 = vld [vmem:[#allocation14 + $0x20] ss:$8 sps:$4 sm:$0xff]  }
 0xacb   : > { %1995 = vmatprep.subr.bf16.mxu1 %v3800_v51 }
 0xace   : > { %1996 = vmatpush1.bf16.msra.mxu1 %v3798_v53 }
 0xacf   : > { %1997 = vmatprep.subr.bf16.mxu1 %v3803_v54 }
 0xad2   : > { %1998 = vmatpush1.bf16.msra.mxu1 %v3801_v1 }
 0xad3   : > { %1999 = vmatprep.subr.bf16.mxu1 %v3806_v56 }
 0xb9c   : > { %v1784_v42 = vpop.f32.mrb[24].mxu1 }
 0xb9d   : > { %v1790_v43 = vadd.f32 %v1784_v42, %v1625_v24  ;;  %v3455_v44 = vpop.f32.mrb[25].mxu1 }
 0xb9e   : > { %v1787_v45 = vpop.f32.mrb[26].mxu1 }
 0xb9f   : > { %v3456_v46 = vpop.f32.mrb[27].mxu1  ;;  %v1791_v47 = vadd.f32 %v1790_v43, %v4815_v27  ;;  %v3804_v27 = vld [vmem:[#allocation14 + $0x30] ss:$8 sps:$4 sm:$0xff]  }
 0xba0   : > { %2000 = vmatpush1.bf16.msra.mxu1 %v3804_v27 }
 0xba1   : > { %1792 = vadd.xlane.f32.xlu1 %v1791_v47  ;;  %2001 = vmatprep.subr.bf16.mxu1 %v3810_v57 }
 0xba4   : > { %2002 = vmatpush1.bf16.msra.mxu1 %v3808_v58 }
 0xba5   : > { %2003 = vmatprep.subr.bf16.mxu1 %v3814_v59 }
 0xba8   : > { %2004 = vmatpush1.bf16.msra.mxu1 %v3812_v60 }
 0xba9   : > { %2005 = vmatprep.subr.bf16.mxu1 %v3818_v4 }
 0xbac   : > { %2006 = vmatpush1.bf16.msra.mxu1 %v3816_v5 }
 0xbad   : > { %2007 = vmatprep.subr.bf16.mxu1 %v3822_v32 }
 0xbb0   : > { %2008 = vmatpush1.bf16.msra.mxu1 %v3820_v38  ;;  %v3829_v38 = vld [vmem:[#allocation16 + $0x8] sm:$0xff]  }
 0xbb1   : > { %3483 = vmatprep.subr.bf16.mxu1 %v4307_v0 }
 0xbb3   : > { %2026 = vmatmul.mubr.bf16.vlgmr.msra.gmra.mrb[28].mxu1 %v3824_v8 }
 0xbb4   : > { %3485 = vmatprep.mubr.msk.bf16.mxu1 %vm4309_vm0, %v4307_v0 }
 0xc2e   : > { %v1793_v61 = vpop.xlane.xlu1 %1792 }
 0xc2f   : > { %v1795_v62 = vmul.f32 0.0078125, %v1793_v61 }
 0xc31   : > { %v1796_v63 = vsub.f32 %v1791_v47, %v1795_v62  ;;  %v3830_v62 = vld [vmem:[#allocation16 + $0x10] sm:$0xff]  }
 0xc33   : > { %v1797_v2 = vmul.f32 %v1796_v63, %v1796_v63 }
 0xc35   : > { %1798 = vadd.xlane.f32.xlu0 %v1797_v2 }
 0xc86   : > { %v2027_v22 = vpop.f32.mrb[28].mxu1 }
 0xc87   : > { %v2029_v23 = vpop.f32.mrb[29].mxu1 }
 0xc88   : > { %v2031_v49 = vpop.f32.mrb[30].mxu1 }
 0xc89   : > { %v4950_v24 = vpack.c.bf16 %v2031_v49, %v2027_v22  ;;  %v2033_v25 = vpop.f32.mrb[31].mxu1 }
 0xc8a   : > { %v4952_v26 = vpack.c.bf16 %v2033_v25, %v2029_v23 }
 0xc8b   : > { %2145 = vrot.lane.b32.xlu0 %v4950_v24, %s4310_s22  ;;  %v2043_v28 = vsel %vm1135_vm1, %v4950_v24, 0 }
 0xc8c   : > { %3484 = vmatpush3.bf16.msra.mxu1 %v4952_v26 }
 0xc8d   : > { %3495 = vmatprep.subr.bf16.mxu1 %v4307_v0 }
 0xcc2   : > { %v1799_v12 = vpop.xlane.xlu0 %1798 }
 0xcc3   : > { %v1800_v13 = vmul.f32 0.0078125, %v1799_v12 }
 0xcc5   : > { %v1801_v14 = vadd.f32 1e-05, %v1800_v13 }
 0xcc7   : > { %3868 = vrsqrt.f32 %v1801_v14 }
 0xcd1   : > { %v3869_v15 = vpop.eup %3868 }
 0xcd2   : > { %v1803_v17 = vmul.f32 %v3869_v15, %v1796_v63  ;;  %v3831_v63 = vld [vmem:[#allocation16 + $0x18] sm:$0xff]  }
 0xcd4   : > { %v1810_v19 = vmul.f32 %v3192_v16, %v1803_v17 }
 0xcd6   : > { %v4944_v20 = vadd.f32 %v3193_v18, %v1810_v19 }
 0xcd8   : > { %v1818_v21 = vpack.c.bf16 %v4944_v20, %v4944_v20 }
 0xcda   : > { %3474 = vmatmul.mubr.bf16.vlgmr.msra.gmra.mrb[28].mxu0 %v1818_v21 }
 0xcdb   : > { %3479 = vmatprep.mubr.msk.bf16.mxu0 %vm4309_vm0, %v4307_v0  ;;  %3478 = vmatpush3.bf16.xpose.msra.mxu0 %v2043_v28 }
 0xcdc   : > { %3489 = vmatprep.subr.bf16.mxu0 %v4307_v0 }
 0xcfd   : > { %v2146_v29 = vpop.permute.xlu0 %2145 }
 0xcfe   : > { %v2151_v34 = vsel %vm1135_vm1, %v2146_v29, 0 }
 0xdad   : > { %v1901_v30 = vpop.f32.mrb[28].mxu0 }
 0xdae   : > { %v4961_v31 = vpack.c.bf16 %v1901_v30, %v1901_v30  ;;  %v3475_v33 = vpop.f32.mrb[29].mxu0 }
 0xdaf   : > { %v1904_v35 = vpop.f32.mrb[30].mxu0 }
 0xdb0   : > { %2142 = vrot.lane.b32.xlu0 %v4961_v31, %s4310_s22  ;;  %v3476_v36 = vpop.f32.mrb[31].mxu0  ;;  %3480 = vmatmul.mubr.msk.bf16.vlgmr.msra.gmra.mrb[32].mxu0 %vm1135_vm1, %v4961_v31 }
 0xdb1   : > { %3490 = vmatpush3.bf16.xpose.msra.mxu0 %v2151_v34  ;;  %3491 = vmatprep.mubr.msk.bf16.mxu0 %vm4309_vm0, %v4307_v0 }
 0xdb2   : > { %3501 = vmatprep.subr.bf16.mxu0 %v4307_v0 }
 0xe22   : > { %v2143_v37 = vpop.permute.xlu0 %2142 }
 0xe23   : > { %3492 = vmatmul.mubr.msk.bf16.vlgmr.msra.gmra.mrb[36].mxu0 %vm1135_vm1, %v2143_v37 }
 0xe24   : > { %3505 = vmatprep.mubr.msk.bf16.mxu0 %vm4309_vm0, %v4307_v0  ;;  %3502 = vmatpush3.bf16.msra.mxu0 %v3830_v62 }
 0xe25   : > { %3503 = vmatprep.subr.bf16.mxu0 %v4307_v0 }
 0xe28   : > { %3504 = vmatpush3.bf16.msra.mxu0 %v3831_v63 }
 0xe29   : > { %3517 = vmatprep.subr.bf16.mxu0 %v4307_v0 }
 0xe83   : > { %v2079_v39 = vpop.f32.mrb[32].mxu0 }
 0xe84   : > { %v3481_v40 = vpop.f32.mrb[33].mxu0  ;;  %v2085_v41 = vsel %vm1182_vm3, %v2079_v39, -inf }
 0xe85   : > { %2086 = vmax.xlane.f32.xlu1 %v2085_v41  ;;  %v2082_v42 = vpop.f32.mrb[34].mxu0 }
 0xe86   : > { %v3482_v43 = vpop.f32.mrb[35].mxu0 }
 0xef6   : > { %v2187_v44 = vpop.f32.mrb[36].mxu0 }
 0xef7   : > { %v3493_v45 = vpop.f32.mrb[37].mxu0  ;;  %v2193_v46 = vsel %vm1182_vm3, %v2187_v44, -inf }
 0xef8   : > { %2194 = vmax.xlane.f32.xlu0 %v2193_v46  ;;  %v2190_v47 = vpop.f32.mrb[38].mxu0  ;;  %v3832_v46 = vld [vmem:[#allocation16 + $0x20] sm:$0xff]  }
 0xef9   : > { %v3494_v48 = vpop.f32.mrb[39].mxu0 }
 0xf12   : > { %v2087_v50 = vpop.xlane.xlu1 %2086 }
 0xf13   : > { %v2088_v51 = vsub.f32 %v2079_v39, %v2087_v50 }
 0xf15   : > { %v2089_v52 = vmul.f32 1.442695, %v2088_v51 }
 0xf17   : > { %3870 = vpow2.f32 %v2089_v52 }
 0xf21   : > { %v3871_v53 = vpop.eup %3870 }
 0xf22   : > { %v2091_v54 = vsel %vm1182_vm3, %v3871_v53, 0.0 }
 0xf23   : > { %2092 = vadd.xlane.f32.xlu1 %v2091_v54 }
 0xf85   : > { %v2195_v55 = vpop.xlane.xlu0 %2194 }
 0xf86   : > { %v2196_v1 = vsub.f32 %v2187_v44, %v2195_v55 }
 0xf88   : > { %v2197_v56 = vmul.f32 1.442695, %v2196_v1 }
 0xf8a   : > { %3872 = vpow2.f32 %v2197_v56 }
 0xf94   : > { %v3873_v27 = vpop.eup %3872 }
 0xf95   : > { %v2199_v57 = vsel %vm1182_vm3, %v3873_v27, 0.0 }
 0xf96   : > { %2200 = vadd.xlane.f32.xlu1 %v2199_v57 }
 0xfa7   : > { %2206 = vrot.lane.b32.xlu1 %v4952_v26, %s4310_s22  ;;  %s5212_s22 = sld [smem:[#allocation37_spill]] }
 0xfab   : > { %2365 = vrot.lane.b32.xlu1 %v4950_v24, %s4311_s25 }
 0xfaf   : > { %2363 = vrot.lane.b32.xlu1 %v4961_v31, %s4311_s25 }
 0xfb0   : > { %v2093_v58 = vpop.xlane.xlu1 %2092 }
 0xfb1   : > { %3874 = vrcp.f32 %v2093_v58 }
 0xfbb   : > { %v3875_v59 = vpop.eup %3874 }
 0xfbc   : > { %v2095_v60 = vmul.f32 %v3875_v59, %v3871_v53  ;;  %v3833_v53 = vld [vmem:[#allocation16 + $0x28] sm:$0xff]  }
 0xfbe   : > { %v2096_v61 = vpack.c.bf16 %v2095_v60, %v2095_v60 }
 0xfc0   : > { %3486 = vmatmul.mubr.msk.bf16.vlgmr.msra.gmra.mrb[32].mxu1 %vm1182_vm3, %v2096_v61 }
 0xfc1   : > { %3497 = vmatprep.mubr.msk.bf16.mxu1 %vm4309_vm0, %v4307_v0 }
0x1023   : > { %v2201_v2 = vpop.xlane.xlu1 %2200 }
0x1024   : > { %3876 = vrcp.f32 %v2201_v2 }
0x1027   : > { %v2207_v3 = vpop.permute.xlu1 %2206 }
0x1028   : > { %3496 = vmatpush3.bf16.msra.mxu1 %v2207_v3 }
0x1029   : > { %3509 = vmatprep.subr.bf16.mxu1 %v4307_v0 }
0x102b   : > { %v2366_v12 = vpop.permute.xlu1 %2365 }
0x102c   : > { %v2371_v17 = vsel %vm1135_vm1, %v2366_v12, 0 }
0x102e   : > { %v3877_v4 = vpop.eup %3876 }
0x102f   : > { %v2203_v5 = vmul.f32 %v3877_v4, %v3873_v27  ;;  %v2364_v19 = vpop.permute.xlu1 %2363 }
0x1031   : > { %v2204_v32 = vpack.c.bf16 %v2203_v5, %v2203_v5  ;;  %v3834_v5 = vld [vmem:[#allocation16 + $0x30] sm:$0xff]  }
0x1033   : > { %3498 = vmatmul.mubr.msk.bf16.vlgmr.msra.gmra.mrb[36].mxu1 %vm1182_vm3, %v2204_v32 }
0x1034   : > { %3510 = vmatpush3.bf16.msra.mxu1 %v3828_v6  ;;  %3513 = vmatprep.mubr.msk.bf16.mxu1 %vm4309_vm0, %v4307_v0 }
0x1035   : > { %3511 = vmatprep.subr.bf16.mxu1 %v4307_v0 }
0x1038   : > { %3512 = vmatpush3.bf16.msra.mxu1 %v3829_v38 }
0x1039   : > { %3523 = vmatprep.subr.bf16.mxu1 %v4307_v0 }
0x1093   : > { %v2134_v7 = vpop.f32.mrb[32].mxu1 }
0x1094   : > { %v2140_v8 = vpack.c.bf16 %v2134_v7, %v2134_v7  ;;  %v3487_v9 = vpop.f32.mrb[33].mxu1 }
0x1095   : > { %v2137_v10 = vpop.f32.mrb[34].mxu1 }
0x1096   : > { %v3488_v11 = vpop.f32.mrb[35].mxu1  ;;  %3514 = vmatmul.mubr.msk.bf16.vlgmr.msra.gmra.mrb[40].mxu1 %vm1135_vm1, %v2140_v8 }
0x1097   : > { %3525 = vmatprep.mubr.msk.bf16.mxu1 %vm4309_vm0, %v4307_v0 }
0x1106   : > { %v2246_v13 = vpop.f32.mrb[36].mxu1 }
0x1107   : > { %v2252_v14 = vpack.c.bf16 %v2246_v13, %v2246_v13  ;;  %v3499_v15 = vpop.f32.mrb[37].mxu1 }
0x1108   : > { %v2249_v16 = vpop.f32.mrb[38].mxu1 }
0x1109   : > { %v3500_v18 = vpop.f32.mrb[39].mxu1  ;;  %3506 = vmatmul.mubr.msk.bf16.vlgmr.msra.gmra.mrb[40].mxu0 %vm1135_vm1, %v2252_v14 }
0x110a   : > { %3518 = vmatpush3.bf16.xpose.msra.mxu0 %v2371_v17  ;;  %3519 = vmatprep.mubr.msk.bf16.mxu0 %vm4309_vm0, %v4307_v0 }
0x110b   : > { %3529 = vmatprep.subr.bf16.mxu0 %v4307_v0 }
0x1111   : > { %3520 = vmatmul.mubr.msk.bf16.vlgmr.msra.gmra.mrb[44].mxu0 %vm1135_vm1, %v2364_v19 }
0x1112   : > { %3533 = vmatprep.mubr.msk.bf16.mxu0 %vm4309_vm0, %v4307_v0  ;;  %3530 = vmatpush3.bf16.msra.mxu0 %v3832_v46  ;;  %v3848_v46 = vld [vmem:[#allocation19 + $0x20] sm:$0xff]  }
0x1113   : > { %3531 = vmatprep.subr.bf16.mxu0 %v4307_v0 }
0x1116   : > { %3532 = vmatpush3.bf16.msra.mxu0 %v3833_v53 }
0x1117   : > { %3543 = vmatprep.subr.bf16.mxu0 %v4307_v0 }
0x1169   : > { %v2357_v21 = vpop.f32.mrb[40].mxu1 }
0x116a   : > { %v3515_v22 = vpop.f32.mrb[41].mxu1 }
0x116b   : > { %v2360_v23 = vpop.f32.mrb[42].mxu1 }
0x116c   : > { %v3516_v49 = vpop.f32.mrb[43].mxu1 }
0x11dc   : > { %v2302_v25 = vpop.f32.mrb[40].mxu0 }
0x11dd   : > { %v5006_v28 = vadd.f32 %v2357_v21, %v2302_v25  ;;  %v3507_v29 = vpop.f32.mrb[41].mxu0 }
0x11de   : > { %v2305_v30 = vpop.f32.mrb[42].mxu0  ;;  %v3837_v29 = vld [vmem:[#allocation17 + $0x8] sm:$0xff]  }
0x11df   : > { %v3508_v33 = vpop.f32.mrb[43].mxu0 }
0x11e4   : > { %v2407_v34 = vpop.f32.mrb[44].mxu0 }
0x11e5   : > { %v3521_v35 = vpop.f32.mrb[45].mxu0  ;;  %v2413_v36 = vsel %vm1182_vm3, %v2407_v34, -inf }
0x11e6   : > { %2414 = vmax.xlane.f32.xlu0 %v2413_v36  ;;  %v2410_v37 = vpop.f32.mrb[46].mxu0  ;;  %v3838_v36 = vld [vmem:[#allocation17 + $0x10] sm:$0xff]  }
0x11e7   : > { %v3522_v39 = vpop.f32.mrb[47].mxu0  ;;  %v3839_v37 = vld [vmem:[#allocation17 + $0x18] sm:$0xff]  }
0x11e8   : > { %v3841_v39 = vld [vmem:[#allocation17 + $0x28] sm:$0xff]  }
0x11fc   : > { %2425 = vrot.lane.b32.xlu0 %v4952_v26, %s4311_s25 }
0x1200   : > { %2530 = vrot.lane.b32.xlu0 %v4950_v24, %s4312_s11 }
0x1204   : > { %2528 = vrot.lane.b32.xlu0 %v4961_v31, %s4312_s11 }
0x1273   : > { %v2415_v40 = vpop.xlane.xlu0 %2414 }
0x1274   : > { %v2416_v41 = vsub.f32 %v2407_v34, %v2415_v40  ;;  %v3842_v40 = vld [vmem:[#allocation17 + $0x30] sm:$0xff]  }
0x1276   : > { %v2417_v42 = vmul.f32 1.442695, %v2416_v41  ;;  %v3843_v41 = vld [vmem:[#allocation17 + $0x38] sm:$0xff]  }
0x1277   : > { %v2426_v43 = vpop.permute.xlu0 %2425 }
0x1278   : > { %3878 = vpow2.f32 %v2417_v42  ;;  %3524 = vmatpush3.bf16.msra.mxu1 %v2426_v43  ;;  %v3844_v42 = vld [vmem:[#allocation19] sm:$0xff]   ;;  %v3845_v43 = vld [vmem:[#allocation19 + $0x8] sm:$0xff]  }
0x1279   : > { %3537 = vmatprep.subr.bf16.mxu1 %v4307_v0 }
0x127b   : > { %v2531_v48 = vpop.permute.xlu0 %2530 }
0x127c   : > { %v2536_v51 = vsel %vm1135_vm1, %v2531_v48, 0 }
0x127f   : > { %v2529_v52 = vpop.permute.xlu0 %2528 }
0x1282   : > { %v3879_v44 = vpop.eup %3878 }
0x1283   : > { %v2419_v45 = vsel %vm1182_vm3, %v3879_v44, 0.0 }
0x1284   : > { %2420 = vadd.xlane.f32.xlu1 %v2419_v45  ;;  %v3847_v45 = vld [vmem:[#allocation19 + $0x18] sm:$0xff]  }
0x1311   : > { %v2421_v24 = vpop.xlane.xlu1 %2420 }
0x1312   : > { %3880 = vrcp.f32 %v2421_v24  ;;  %v3849_v24 = vld [vmem:[#allocation19 + $0x28] sm:$0xff]  }
0x131c   : > { %v3881_v47 = vpop.eup %3880 }
0x131d   : > { %v2423_v31 = vmul.f32 %v3881_v47, %v3879_v44  ;;  %v3846_v44 = vld [vmem:[#allocation19 + $0x10] sm:$0xff]  }
0x131f   : > { %v2424_v50 = vpack.c.bf16 %v2423_v31, %v2423_v31 }
0x1321   : > { %3526 = vmatmul.mubr.msk.bf16.vlgmr.msra.gmra.mrb[44].mxu1 %vm1182_vm3, %v2424_v50 }
0x1322   : > { %3538 = vmatpush3.bf16.xpose.msra.mxu1 %v2536_v51  ;;  %3539 = vmatprep.mubr.msk.bf16.mxu1 %vm4309_vm0, %v4307_v0  ;;  %v3239_v51 = vld [vmem:[%s5212_s22] ss:$0 sm:$0xff]  ;;  %s5216_s22 = sld [smem:[#allocation41_spill]] }
0x1323   : > { %3549 = vmatprep.subr.bf16.mxu1 %v4307_v0 }
0x1329   : > { %3540 = vmatmul.mubr.msk.bf16.vlgmr.msra.gmra.mrb[48].mxu1 %vm1135_vm1, %v2529_v52 }
0x132a   : > { %3553 = vmatprep.mubr.msk.bf16.mxu1 %vm4309_vm0, %v4307_v0  ;;  %3550 = vmatpush3.bf16.msra.mxu1 %v3834_v5 }
0x132b   : > { %3551 = vmatprep.subr.bf16.mxu1 %v4307_v0 }
0x13f4   : > { %v2465_v54 = vpop.f32.mrb[44].mxu1 }
0x13f5   : > { %v2471_v55 = vpack.c.bf16 %v2465_v54, %v2465_v54  ;;  %v3527_v1 = vpop.f32.mrb[45].mxu1 }
0x13f6   : > { %v2468_v56 = vpop.f32.mrb[46].mxu1 }
0x13f7   : > { %v3528_v27 = vpop.f32.mrb[47].mxu1  ;;  %3534 = vmatmul.mubr.msk.bf16.vlgmr.msra.gmra.mrb[48].mxu0 %vm1135_vm1, %v2471_v55  ;;  %v3850_v56 = vld [vmem:[#allocation19 + $0x30] sm:$0xff]  }
0x13f8   : > { %3545 = vmatprep.mubr.msk.bf16.mxu0 %vm4309_vm0, %v4307_v0  ;;  %v3851_v27 = vld [vmem:[#allocation19 + $0x38] sm:$0xff]  }
0x13fc   : > { %v2572_v57 = vpop.f32.mrb[48].mxu1 }
0x13fd   : > { %v3541_v58 = vpop.f32.mrb[49].mxu1  ;;  %v2578_v59 = vsel %vm1182_vm3, %v2572_v57, -inf }
0x13fe   : > { %2579 = vmax.xlane.f32.xlu0 %v2578_v59  ;;  %v2575_v60 = vpop.f32.mrb[50].mxu1 }
0x13ff   : > { %v3542_v61 = vpop.f32.mrb[51].mxu1 }
0x148b   : > { %v2580_v62 = vpop.xlane.xlu0 %2579 }
0x148c   : > { %v2581_v63 = vsub.f32 %v2572_v57, %v2580_v62  ;;  %v3241_v57 = vld [vmem:[%s5214_s3] ss:$0 sm:$0xff]  ;;  %s2951_s3 = sshll.u32 %s762_s29, 4  ;;  %s5084_s3 = int_to_ptr.vmem [resolvable:$true] %s2951_s3 }
0x148d   : > { %p4207_p4 = scmp.lt.s32.totalorder %s5084_s3, %s4205_s16 }
0x148e   : > { %v2582_v2 = vmul.f32 1.442695, %v2581_v63 }
0x1490   : > { %3882 = vpow2.f32 %v2582_v2 }
0x149a   : > { %v3883_v3 = vpop.eup %3882 }
0x149b   : > { %v2584_v4 = vsel %vm1182_vm3, %v3883_v3, 0.0 }
0x149c   : > { %2585 = vadd.xlane.f32.xlu1 %v2584_v4 }
0x14ad   : > { %2590 = vrot.lane.b32.xlu1 %v4952_v26, %s4312_s11  ;;  %v3835_v26 = vld [vmem:[#allocation16 + $0x38] sm:$0xff]   ;;  %s5213_s11 = sld [smem:[#allocation38_spill]] }
0x14ae   : > { %3552 = vmatpush3.bf16.msra.mxu1 %v3835_v26 }
0x14af   : > { %3577 = vmatprep.subr.bf16.mxu1 %v4307_v0 }
0x14b3   : > { %v3240_v53 = vld [vmem:[%s5213_s11] ss:$0 sm:$0xff]  ;;  %s5217_s11 = sld [smem:[#allocation42_spill]] }
0x14ca   : > { %v2521_v6 = vpop.f32.mrb[48].mxu0 }
0x14cb   : > { %v2527_v32 = vadd.f32 %v2521_v6, %v5006_v28  ;;  %v3535_v38 = vpop.f32.mrb[49].mxu0  ;;  %v3836_v28 = vld [vmem:[#allocation17] sm:$0xff]  }
0x14cc   : > { %v2524_v7 = vpop.f32.mrb[50].mxu0 }
0x14cd   : > { %v3536_v8 = vpop.f32.mrb[51].mxu0 }
0x1529   : > { %v2586_v9 = vpop.xlane.xlu1 %2585 }
0x152a   : > { %3884 = vrcp.f32 %v2586_v9 }
0x152d   : > { %v2591_v10 = vpop.permute.xlu1 %2590 }
0x152e   : > { %3544 = vmatpush3.bf16.msra.mxu0 %v2591_v10 }
0x152f   : > { %3557 = vmatprep.subr.bf16.mxu0 %v4307_v0 }
0x1534   : > { %v3885_v11 = vpop.eup %3884 }
0x1535   : > { %v2588_v12 = vmul.f32 %v3885_v11, %v3883_v3  ;;  %v3250_v3 = vld [vmem:[%s5215_s4] ss:$0 sm:$0xff]  ;;  %s5218_s4 = sld [smem:[#allocation43_spill]] }
0x1537   : > { %v2589_v13 = vpack.c.bf16 %v2588_v12, %v2588_v12 }
0x1539   : > { %3546 = vmatmul.mubr.msk.bf16.vlgmr.msra.gmra.mrb[52].mxu0 %vm1182_vm3, %v2589_v13 }
0x153a   : > { %3573 = vmatprep.mubr.msk.bf16.mxu0 %vm4309_vm0, %v4307_v0  ;;  %3558 = vmatpush3.bf16.msra.mxu0 %v3836_v28 }
0x153b   : > { %3559 = vmatprep.subr.bf16.mxu0 %v4307_v0  ;;  %s5082_s7 = scalar_lea.hbm %s5218_s4, %s3262_s26 }
0x153e   : > { %3560 = vmatpush3.bf16.msra.mxu0 %v3837_v29 }
0x153f   : > { %3561 = vmatprep.subr.bf16.mxu0 %v4307_v0 }
0x1542   : > { %3562 = vmatpush3.bf16.msra.mxu0 %v3838_v36 }
0x1543   : > { %3563 = vmatprep.subr.bf16.mxu0 %v4307_v0 }
0x1546   : > { %3564 = vmatpush3.bf16.msra.mxu0 %v3839_v37 }
0x1547   : > { %3565 = vmatprep.subr.bf16.mxu0 %v4307_v0 }
0x160c   : > { %v2630_v14 = vpop.f32.mrb[52].mxu0 }
0x160d   : > { %v2636_v15 = vpack.c.bf16 %v2630_v14, %v2630_v14  ;;  %v3547_v16 = vpop.f32.mrb[53].mxu0  ;;  %v3259_v14 = vld [vmem:[%s5216_s22] ss:$0 sm:$0xff]  ;;  %s4200_s22 = scalar_lea.vmem %s5084_s3, 128 }
0x160e   : > { %v2633_v17 = vpop.f32.mrb[54].mxu0  ;;  %v3260_v16 = vld [vmem:[%s5217_s11] ss:$0 sm:$0xff]  ;;  %p4201_p2 = scmp.ne.s32.totalorder %s5084_s3, %s4200_s22  ;;  %p4208_p10 = scmp.lt.s32.totalorder %s4206_s18, %s4200_s22 }
0x160f   : > { %v3548_v18 = vpop.f32.mrb[55].mxu0  ;;  %3554 = vmatmul.mubr.msk.bf16.vlgmr.msra.gmra.mrb[52].mxu1 %vm1135_vm1, %v2636_v15 }
0x1610   : > { %3593 = vmatprep.mubr.msk.bf16.mxu1 %vm4309_vm0, %v4307_v0  ;;  %3578 = vmatpush3.bf16.msra.mxu1 %v3844_v42  ;;  %p4202_p8 = pnand %p4201_p2, %p5220_p3  ;;  %p4209_p11 = por %p4208_p10, %p4207_p4 }
0x1611   : > { %3579 = vmatprep.subr.bf16.mxu1 %v4307_v0 }
0x1612   : > { %p4203_p5 = pneg %p4202_p8 }
0x1614   : > { %3580 = vmatpush3.bf16.msra.mxu1 %v3845_v43  ;;  %p4210_p7 = pnand %p4209_p11, %p4203_p5 }
0x1615   : > { %3581 = vmatprep.subr.bf16.mxu1 %v4307_v0 }
0x1618   : > { %3582 = vmatpush3.bf16.msra.mxu1 %v3846_v44 }
0x1619   : > { %3583 = vmatprep.subr.bf16.mxu1 %v4307_v0 }
0x161c   : > { %3584 = vmatpush3.bf16.msra.mxu1 %v3847_v45 }
0x161d   : > { %3585 = vmatprep.subr.bf16.mxu1 %v4307_v0 }
0x1620   : > { %3586 = vmatpush3.bf16.msra.mxu1 %v3848_v46 }
0x1621   : > { %3587 = vmatprep.subr.bf16.mxu1 %v4307_v0 }
0x1624   : > { %3588 = vmatpush3.bf16.msra.mxu1 %v3849_v24 }
0x1625   : > { %3589 = vmatprep.subr.bf16.mxu1 %v4307_v0 }
0x1628   : > { %3590 = vmatpush3.bf16.msra.mxu1 %v3850_v56 }
0x1629   : > { %3591 = vmatprep.subr.bf16.mxu1 %v4307_v0 }
0x162c   : > { %3592 = vmatpush3.bf16.msra.mxu1 %v3851_v27 }
0x16e2   : > { %v2686_v19 = vpop.f32.mrb[52].mxu1 }
0x16e3   : > { %v2692_v21 = vadd.f32 %v2686_v19, %v2527_v32  ;;  %v3555_v22 = vpop.f32.mrb[53].mxu1 }
0x16e4   : > { %v2689_v23 = vpop.f32.mrb[54].mxu1 }
0x16e5   : > { %v3556_v49 = vpop.f32.mrb[55].mxu1  ;;  %v2693_v25 = vadd.f32 %v2692_v21, %v4944_v20  ;;  %v3840_v20 = vld [vmem:[#allocation17 + $0x20] sm:$0xff]  }
0x16e6   : > { %3566 = vmatpush3.bf16.msra.mxu0 %v3840_v20 }
0x16e7   : > { %2694 = vadd.xlane.f32.xlu1 %v2693_v25  ;;  %3567 = vmatprep.subr.bf16.mxu0 %v4307_v0 }
0x16ea   : > { %3568 = vmatpush3.bf16.msra.mxu0 %v3841_v39 }
0x16eb   : > { %3569 = vmatprep.subr.bf16.mxu0 %v4307_v0 }
0x16ee   : > { %3570 = vmatpush3.bf16.msra.mxu0 %v3842_v40 }
0x16ef   : > { %3571 = vmatprep.subr.bf16.mxu0 %v4307_v0 }
0x16f2   : > { %3572 = vmatpush3.bf16.msra.mxu0 %v3843_v41 }
0x1774   : > { %v2695_v30 = vpop.xlane.xlu1 %2694 }
0x1775   : > { %v2696_v33 = vmul.f32 0.0078125, %v2695_v30 }
0x1777   : > { %v2697_v34 = vsub.f32 %v2693_v25, %v2696_v33 }
0x1779   : > { %v2698_v35 = vmul.f32 %v2697_v34, %v2697_v34 }
0x177b   : > { %2699 = vadd.xlane.f32.xlu0 %v2698_v35 }
0x1808   : > { %v2700_v47 = vpop.xlane.xlu0 %2699 }
0x1809   : > { %v2701_v31 = vmul.f32 0.0078125, %v2700_v47 }
0x180b   : > { %v2702_v48 = vadd.f32 1e-05, %v2701_v31 }
0x180d   : > { %3886 = vrsqrt.f32 %v2702_v48 }
0x1817   : > { %v3887_v50 = vpop.eup %3886 }
0x1818   : > { %v2704_v52 = vmul.f32 %v3887_v50, %v2697_v34 }
0x181a   : > { %v2711_v54 = vmul.f32 %v3239_v51, %v2704_v52 }
0x181c   : > { %v2718_v55 = vadd.f32 %v3240_v53, %v2711_v54 }
0x181e   : > { %v2719_v1 = vpack.c.bf16 %v2718_v55, %v2718_v55 }
0x1820   : > { %3574 = vmatmul.mubr.bf16.vlgmr.msra.gmra.mrb[56].mxu0 %v2719_v1 }
0x18f3   : > { %v2808_v58 = vpop.f32.mrb[56].mxu0 }
0x18f4   : > { %v2809_v59 = vadd.f32 %v3241_v57, %v2808_v58  ;;  %v3575_v60 = vpop.f32.mrb[57].mxu0 }
0x18f5   : > { %v2811_v61 = vpop.f32.mrb[58].mxu0 }
0x18f6   : > { %v2814_v62 = vmax.f32 %v2809_v59, 0.0  ;;  %v3576_v63 = vpop.f32.mrb[59].mxu0 }
0x18f8   : > { %v2815_v2 = vpack.c.bf16 %v2814_v62, %v2814_v62 }
0x18fa   : > { %3594 = vmatmul.mubr.bf16.vlgmr.msra.gmra.mrb[56].mxu1 %v2815_v2 }
0x19cd   : > { %v2904_v4 = vpop.f32.mrb[56].mxu1 }
0x19ce   : > { %v2905_v0 = vadd.f32 %v3250_v3, %v2904_v4  ;;  %v3595_v5 = vpop.f32.mrb[57].mxu1 }
0x19cf   : > { %v2907_v6 = vpop.f32.mrb[58].mxu1 }
0x19d0   : > { %v3596_v32 = vpop.f32.mrb[59].mxu1  ;;  %v2910_v38 = vadd.f32 %v2905_v0, %v2718_v55 }
0x19d2   : > { %2911 = vadd.xlane.f32.xlu0 %v2910_v38 }
0x1a5f   : > { %v2912_v7 = vpop.xlane.xlu0 %2911 }
0x1a60   : > { %v2913_v8 = vmul.f32 0.0078125, %v2912_v7 }
0x1a62   : > { %v2914_v9 = vsub.f32 %v2910_v38, %v2913_v8 }
0x1a64   : > { %v2915_v10 = vmul.f32 %v2914_v9, %v2914_v9 }
0x1a66   : > { %2916 = vadd.xlane.f32.xlu0 %v2915_v10 }
0x1af3   : > { %v2917_v11 = vpop.xlane.xlu0 %2916 }
0x1af4   : > { %v2918_v12 = vmul.f32 0.0078125, %v2917_v11 }
0x1af6   : > { %v2919_v13 = vadd.f32 1e-05, %v2918_v12 }
0x1af8   : > { %3888 = vrsqrt.f32 %v2919_v13 }
0x1b02   : > { %v3889_v26 = vpop.eup %3888 }
0x1b03   : > { %v2921_v15 = vmul.f32 %v3889_v26, %v2914_v9 }
0x1b05   : > { %v2928_v17 = vmul.f32 %v3259_v14, %v2921_v15 }
0x1b07   : > { %v2935_v18 = vadd.f32 %v3260_v16, %v2928_v17 }
0x1b09   : > { %2936 = vst [vmem:[%s762_s29] sm:$0xff] %v2935_v18 }
0x1b0a   : > { %4213 = shalt.err (!%p4210_p7)
}
0x1b0b   : > { %s4214_s25 = scalar_lea.hbm %s5082_s7, 128  ;;  %s4218_s29 = scalar_lea.hbm %s5218_s4, 256 }
0x1b0c   : > { %p4215_p9 = scmp.ne.s32.totalorder %s5082_s7, %s4214_s25  ;;  %p4219_p1 = scmp.lt.u32.totalorder %s5082_s7, %s5218_s4 }
0x1b0d   : > { %p4220_p13 = scmp.lt.u32.totalorder %s4218_s29, %s4214_s25  ;;  %p4222_p2 = scmp.lt.u32.totalorder %s4214_s25, %s5082_s7 }
0x1b0e   : > { %p4216_p12 = pnand %p4215_p9, %p5220_p3 }
0x1b0f   : > { %p4221_p0 = por %p4220_p13, %p4219_p1 }
0x1b10   : > { %p4217_p6 = pneg %p4216_p12 }
0x1b11   : > { %p4223_p8 = por %p4222_p2, %p4221_p0 }
0x1b13   : > { %p4224_p5 = pnand %p4223_p8, %p4217_p6 }
0x1b15   : > { %4227 = shalt.err (!%p4224_p5)
}
0x1b16   : > { %3639 = dma.vmem_to_hbm [thread:$0]  (%p5220_p3), %s5084_s3, 128, %s5082_s7, %s2938_s17  }
0x1b17 PF: > { %s2963_s12 = sand.u32 1, %s4278_s0   ;;  %p5221_p4 = scmp.ne.s32.totalorder %s5194_s28, 0 }
0x1b18   : > { %p5222_p10 = scmp.ge.s32.totalorder %s4290_s21, 2  ;;  %s2964_s22 = scalar_lea.sflag [#allocation4], %s2963_s12 }
0x1b1a   : > { %p3677_p11 = pnand %p5222_p10, %p5221_p4 }
0x1b1c   : > { %4273 = dma.done.wait (!%p3677_p11), %s2964_s22, 128  }
0x1b1d   : > { %4275 = vsyncadd (!%p3677_p11), %s2964_s22, 4294967168  ;;  %p37_p7 = scmp.ge.s32.totalorder %s4692_s24, 4   ;;  %s5223_s0 = smov %s4282_s30 }
0x1b1e   : > { %s5224_s30 = smov %s4286_s20  ;;  %s5225_s20 = smov %s4703_s6 }
0x1b1f   : > { %s5226_s21 = smov %s4692_s24  ;;  %39 = sbr.rel (!%p37_p7) target bundleno = 26 (0x1a), region = 182 }
0x1b26   :  { %2969 = vsyncpa [#allocation3], 1 }
0x1b27   :  { %2971 = vsyncpa [#allocation3 + $0x1], 1 }
0x1b28   :  { %2972 = vsyncpa [#allocation6], 1 }
0x1b29   :  { %2974 = vsyncpa [#allocation6 + $0x1], 1 }
0x1b2a   :  { %2975 = vsyncpa [#allocation9], 1 }
0x1b2b   :  { %2976 = vsyncpa [#allocation12], 1 }
0x1b2c   :  { %2977 = vsyncpa [#allocation15], 1 }
0x1b2d   :  { %2978 = vsyncpa [#allocation18], 1 }
0x1b2e   :  { %2979 = vsyncpa [#allocation4], 1 }
0x1b2f   :  { %2981 = vsyncpa [#allocation4 + $0x1], 1 }

</bundles_post_ra>
